<compile_context>
chip_gen: v7x
topology: tpu7x:2x2x1
jax: 0.10.0
libtpu: 0.0.40
codegen_flags: <defaults>
</compile_context>

<pallas_src>
import jax
import jax.numpy as jnp
from jax.experimental import pallas as pl
from jax.experimental.pallas import tpu as pltpu

LANE = 128  # TPU lane width


def _round_up(n, m):
    return ((n + m - 1) // m) * m


# ---------------------------------------------------------------------------
# Parameter setup (glue, plain JAX)
# ---------------------------------------------------------------------------
def _l2_normalize(v, eps=1e-12):
    return v / jnp.maximum(jnp.linalg.norm(v), eps)


def spectral_normalize(w, u, n_power_iterations=1):
    """PyTorch-style spectral norm: w / sigma from power iteration on u.

    TODO(synk): PyTorch's SpectralNorm also updates the u buffer in-place on
    every training-mode forward; we compute the same sigma but do not return
    the updated u (fine for a single forward pass, not for step-by-step
    training parity).
    """
    v = None
    for _ in range(n_power_iterations):
        v = _l2_normalize(w.T @ u)
        u = _l2_normalize(w @ v)
    sigma = u @ (w @ v)
    return w / sigma


def init_params(key, input_dim, hidden_sizes, num_classes):
    """Deterministic Kaiming-uniform-ish init, PyTorch Linear style."""
    dims = [input_dim] + list(hidden_sizes) + [num_classes]
    params = []
    for i in range(len(dims) - 1):
        fan_in, fan_out = dims[i], dims[i + 1]
        key, kw, kb, ku = jax.random.split(key, 4)
        bound = 1.0 / jnp.sqrt(fan_in)
        w = jax.random.uniform(kw, (fan_out, fan_in), jnp.float32, -bound, bound)
        b = jax.random.uniform(kb, (fan_out,), jnp.float32, -bound, bound)
        u = _l2_normalize(jax.random.normal(ku, (fan_out,), jnp.float32))
        params.append((w, b, u))
    return params


def prepare_padded_params(params, n_power_iterations=1):
    """Cold path (run once per weight update, or fused by jit):
    spectral-normalize, transpose to [in, out], zero-pad hidden/class dims to
    lane (128) multiples, cast weights to bf16 (biases stay f32)."""
    (w1, b1, u1), (w2, b2, u2), (w3, b3, u3) = params
    w1 = spectral_normalize(w1, u1, n_power_iterations)
    w2 = spectral_normalize(w2, u2, n_power_iterations)
    w3 = spectral_normalize(w3, u3, n_power_iterations)

    D = w1.shape[1]
    H1, H2, C = w1.shape[0], w2.shape[0], w3.shape[0]
    H1p, H2p, Cp = (_round_up(d, LANE) for d in (H1, H2, C))

    w1t = jnp.zeros((D, H1p), jnp.float32).at[:, :H1].set(w1.T).astype(jnp.bfloat16)
    w2t = jnp.zeros((H1p, H2p), jnp.float32).at[:H1, :H2].set(w2.T).astype(jnp.bfloat16)
    w3t = jnp.zeros((H2p, Cp), jnp.float32).at[:H2, :C].set(w3.T).astype(jnp.bfloat16)
    b1r = jnp.zeros((1, H1p), jnp.float32).at[:, :H1].set(b1[None, :])
    b2r = jnp.zeros((1, H2p), jnp.float32).at[:, :H2].set(b2[None, :])
    b3r = jnp.zeros((1, Cp), jnp.float32).at[:, :C].set(b3[None, :])
    return (w1t, b1r, w2t, b2r, w3t, b3r)


# ---------------------------------------------------------------------------
# Pallas kernel: 3-layer MLP forward (hot path)
# ---------------------------------------------------------------------------
def mlp_kernel(x_ref, w1_ref, b1_ref, w2_ref, b2_ref, w3_ref, b3_ref, o_ref):
    # bf16 operands, f32 accumulation on the MXU; bias/ReLU on the VPU.
    x = x_ref[...]
    h1 = jnp.dot(x, w1_ref[...], preferred_element_type=jnp.float32) + b1_ref[...]
    h1 = jnp.maximum(h1, 0.0).astype(jnp.bfloat16)
    h2 = jnp.dot(h1, w2_ref[...], preferred_element_type=jnp.float32) + b2_ref[...]
    h2 = jnp.maximum(h2, 0.0).astype(jnp.bfloat16)
    o_ref[...] = (
        jnp.dot(h2, w3_ref[...], preferred_element_type=jnp.float32) + b3_ref[...]
    )


def _pick_batch_tile(B):
    # Per-grid-step compute is tens of ns while per-step pipeline overhead is
    # ~0.35 us, so fewer (ideally one) steps wins on single-TC chips.
    if B <= 1024:
        return _round_up(B, 8)  # single grid step
    # Larger batches: ~2 steps in 256-row multiples -> fills the 256x256 MXU
    # M-dim (v6e/v7x) and gives v7x megacore one "parallel" step per TC.
    # Cap the tile so f32 intermediates (tile x 128) stay a few MiB.
    return min(_round_up(pl.cdiv(B, 2), 256), 4096)


def mlp_forward_pallas(x, padded_params, num_classes, batch_tile=None,
                       single_buffer_weights=True):
    """Hot path: logits [B, num_classes] (f32) from pre-padded bf16 weights."""
    w1t, b1r, w2t, b2r, w3t, b3r = padded_params
    B, D = x.shape
    H1p, H2p, Cp = w1t.shape[1], w2t.shape[1], w3t.shape[1]

    if batch_tile is None:
        batch_tile = _pick_batch_tile(B)
    batch_tile = max(8, _round_up(batch_tile, 8))

    x_bf = x.astype(jnp.bfloat16)
    Bp = _round_up(B, batch_tile)
    if Bp != B:
        x_bf = jnp.zeros((Bp, D), jnp.bfloat16).at[:B, :].set(x_bf)

    # Grid-invariant weight/bias blocks: single-buffer them (index_map is a
    # constant (0,0), so a second pipeline buffer is pure VMEM waste).
    if single_buffer_weights:
        def const_spec(shp):
            return pl.BlockSpec(shp, lambda i: (0,) * len(shp),
                                pipeline_mode=pl.Buffered(1))
    else:
        def const_spec(shp):
            return pl.BlockSpec(shp, lambda i: (0,) * len(shp))

    grid = (Bp // batch_tile,)
    # TODO(synk): for hidden sizes >= ~4096 the fully-replicated W2^T block no
    # longer fits v7x's 64 MiB VMEM; switch to a K/N-tiled grid (accumulator
    # scratch + pl.when init/finalize, reduction axis last, "arbitrary")
    # instead of full-weight replication.
    out = pl.pallas_call(
        mlp_kernel,
        out_shape=jax.ShapeDtypeStruct((Bp, Cp), jnp.float32),
        grid_spec=pltpu.PrefetchScalarGridSpec(
            num_scalar_prefetch=0,
            grid=grid,
            in_specs=[
                pl.BlockSpec((batch_tile, D), lambda i: (i, 0)),  # x tile
                const_spec((D, H1p)),                             # W1^T
                const_spec((1, H1p)),                             # b1
                const_spec((H1p, H2p)),                           # W2^T
                const_spec((1, H2p)),                             # b2
                const_spec((H2p, Cp)),                            # W3^T
                const_spec((1, Cp)),                              # b3
            ],
            out_specs=pl.BlockSpec((batch_tile, Cp), lambda i: (i, 0)),
        ),
        compiler_params=pltpu.CompilerParams(
            dimension_semantics=("parallel",)),
    )(x_bf, w1t, b1r, w2t, b2r, w3t, b3r)
    # Slice off batch/class padding.
    return out[:B, :num_classes]


def spectral_norm_classifier_forward(x, params, n_power_iterations=1,
                                     batch_tile=None,
                                     single_buffer_weights=True):
    """Full forward (spectral norm + MLP). Jit this, or call
    prepare_padded_params once and mlp_forward_pallas per batch."""
    padded = prepare_padded_params(params, n_power_iterations)
    num_classes = params[-1][0].shape[0]
    return mlp_forward_pallas(x, padded, num_classes, batch_tile,
                              single_buffer_weights)


# ---------------------------------------------------------------------------
# Pure JAX reference mirroring the kernel numerics (bf16 operands, f32 accum)
# ---------------------------------------------------------------------------
def reference_forward(x, params, n_power_iterations=1):
    h = x.astype(jnp.bfloat16)
    n = len(params)
    for i, (w, b, u) in enumerate(params):
        w_sn = spectral_normalize(w, u, n_power_iterations).astype(jnp.bfloat16)
        h = h.astype(jnp.float32) @ w_sn.T.astype(jnp.float32) + b
        if i < n - 1:
            h = jnp.maximum(h, 0.0).astype(jnp.bfloat16)
    return h


if __name__ == "__main__":
    # Module defaults: hidden_sizes=[128, 64], num_classes=2,
    # n_power_iterations=1, dropout=0.0, batch_norm=False.
    input_dim = 32
    hidden_sizes = [128, 64]
    num_classes = 2
    batch = 256  # -> one 256-row grid step (full MXU M-dim pass, no step waste)

    key = jax.random.PRNGKey(0)
    key_x, key_p = jax.random.split(key)
    x = jax.random.normal(key_x, (batch, input_dim), dtype=jnp.float32)
    params = init_params(key_p, input_dim, hidden_sizes, num_classes)

    # Jit the entire forward so the spectral-norm / pad / cast prep fuses into
    # a handful of ops instead of launching ~a dozen micro-ops per call.
    forward = jax.jit(
        spectral_norm_classifier_forward,
        static_argnames=("n_power_iterations", "batch_tile",
                         "single_buffer_weights"),
    )

    try:
        logits = jax.block_until_ready(forward(x, params))
    except Exception:
        # Fallback for JAX versions without BlockSpec pipeline_mode support.
        logits = jax.block_until_ready(
            forward(x, params, single_buffer_weights=False))

    ref = reference_forward(x, params, n_power_iterations=1)
    assert logits.shape == (batch, num_classes)
    assert jnp.allclose(logits, ref, atol=1e-2, rtol=1e-2), "mismatch vs reference"

    print("KERNEL_OK")
</pallas_src>

<mosaic_0001>
module attributes {stable_mosaic.version = 11 : i64} {
  func.func @mlp_kernel(%arg0: i32, %arg1: memref<256x32xbf16, #tpu.memory_space<vmem>>, %arg2: memref<32x128xbf16, #tpu.memory_space<vmem>>, %arg3: memref<1x128xf32, #tpu.memory_space<vmem>>, %arg4: memref<128x128xbf16, #tpu.memory_space<vmem>>, %arg5: memref<1x128xf32, #tpu.memory_space<vmem>>, %arg6: memref<128x128xbf16, #tpu.memory_space<vmem>>, %arg7: memref<1x128xf32, #tpu.memory_space<vmem>>, %arg8: memref<256x128xf32, #tpu.memory_space<vmem>>) attributes {dimension_semantics = [#tpu.dimension_semantics<parallel>], iteration_bounds = array<i64: 1>, scalar_prefetch = 0 : i64, scratch_operands = 0 : i64, tpu.core_type = #tpu.core_type<tc>, window_params = [{transform_indices = @transform_0, window_bounds = array<i64: 256, 32>}, {pipeline_mode = #tpu.pipeline_mode<synchronous>, transform_indices = @transform_1, window_bounds = array<i64: 32, 128>}, {pipeline_mode = #tpu.pipeline_mode<synchronous>, transform_indices = @transform_2, window_bounds = array<i64: 1, 128>}, {pipeline_mode = #tpu.pipeline_mode<synchronous>, transform_indices = @transform_3, window_bounds = array<i64: 128, 128>}, {pipeline_mode = #tpu.pipeline_mode<synchronous>, transform_indices = @transform_4, window_bounds = array<i64: 1, 128>}, {pipeline_mode = #tpu.pipeline_mode<synchronous>, transform_indices = @transform_5, window_bounds = array<i64: 128, 128>}, {pipeline_mode = #tpu.pipeline_mode<synchronous>, transform_indices = @transform_6, window_bounds = array<i64: 1, 128>}, {transform_indices = @transform_7, window_bounds = array<i64: 256, 128>}]} {
    %c0 = arith.constant 0 : index
    %c0_0 = arith.constant 0 : index
    %0 = vector.load %arg1[%c0, %c0_0] : memref<256x32xbf16, #tpu.memory_space<vmem>>, vector<256x32xbf16>
    %c0_1 = arith.constant 0 : index
    %c0_2 = arith.constant 0 : index
    %1 = vector.load %arg2[%c0_1, %c0_2] : memref<32x128xbf16, #tpu.memory_space<vmem>>, vector<32x128xbf16>
    %cst = arith.constant dense<0.000000e+00> : vector<256x128xf32>
    %2 = tpu.matmul %0, %1, %cst {dimension_numbers = #tpu.dot_dimension_numbers<[1], [0], [0], [1], [0, 0, 1, 1], [], []>} : vector<256x32xbf16>, vector<32x128xbf16>, vector<256x128xf32> -> vector<256x128xf32>
    %c0_3 = arith.constant 0 : index
    %c0_4 = arith.constant 0 : index
    %3 = vector.load %arg3[%c0_3, %c0_4] : memref<1x128xf32, #tpu.memory_space<vmem>>, vector<1x128xf32>
    %4 = vector.broadcast %3 : vector<1x128xf32> to vector<256x128xf32>
    %5 = arith.addf %2, %4 : vector<256x128xf32>
    %cst_5 = arith.constant 0.000000e+00 : f32
    %6 = vector.broadcast %cst_5 : f32 to vector<256x128xf32>
    %7 = arith.maximumf %5, %6 : vector<256x128xf32>
    %8 = arith.truncf %7 : vector<256x128xf32> to vector<256x128xbf16>
    %c0_6 = arith.constant 0 : index
    %c0_7 = arith.constant 0 : index
    %9 = vector.load %arg4[%c0_6, %c0_7] : memref<128x128xbf16, #tpu.memory_space<vmem>>, vector<128x128xbf16>
    %cst_8 = arith.constant dense<0.000000e+00> : vector<256x128xf32>
    %10 = tpu.matmul %8, %9, %cst_8 {dimension_numbers = #tpu.dot_dimension_numbers<[1], [0], [0], [1], [0, 0, 1, 1], [], []>} : vector<256x128xbf16>, vector<128x128xbf16>, vector<256x128xf32> -> vector<256x128xf32>
    %c0_9 = arith.constant 0 : index
    %c0_10 = arith.constant 0 : index
    %11 = vector.load %arg5[%c0_9, %c0_10] : memref<1x128xf32, #tpu.memory_space<vmem>>, vector<1x128xf32>
    %12 = vector.broadcast %11 : vector<1x128xf32> to vector<256x128xf32>
    %13 = arith.addf %10, %12 : vector<256x128xf32>
    %cst_11 = arith.constant 0.000000e+00 : f32
    %14 = vector.broadcast %cst_11 : f32 to vector<256x128xf32>
    %15 = arith.maximumf %13, %14 : vector<256x128xf32>
    %16 = arith.truncf %15 : vector<256x128xf32> to vector<256x128xbf16>
    %c0_12 = arith.constant 0 : index
    %c0_13 = arith.constant 0 : index
    %17 = vector.load %arg6[%c0_12, %c0_13] : memref<128x128xbf16, #tpu.memory_space<vmem>>, vector<128x128xbf16>
    %cst_14 = arith.constant dense<0.000000e+00> : vector<256x128xf32>
    %18 = tpu.matmul %16, %17, %cst_14 {dimension_numbers = #tpu.dot_dimension_numbers<[1], [0], [0], [1], [0, 0, 1, 1], [], []>} : vector<256x128xbf16>, vector<128x128xbf16>, vector<256x128xf32> -> vector<256x128xf32>
    %c0_15 = arith.constant 0 : index
    %c0_16 = arith.constant 0 : index
    %19 = vector.load %arg7[%c0_15, %c0_16] : memref<1x128xf32, #tpu.memory_space<vmem>>, vector<1x128xf32>
    %20 = vector.broadcast %19 : vector<1x128xf32> to vector<256x128xf32>
    %21 = arith.addf %18, %20 : vector<256x128xf32>
    %c0_17 = arith.constant 0 : index
    %c0_18 = arith.constant 0 : index
    %22 = vector.load %arg8[%c0_17, %c0_18] : memref<256x128xf32, #tpu.memory_space<vmem>>, vector<256x128xf32>
    tpu.vector_store %arg8[%c0_17, %c0_18], %21 {strides = array<i32>} : memref<256x128xf32, #tpu.memory_space<vmem>>, vector<256x128xf32>,
    return
  }
  func.func @transform_0(%arg0: i32) -> (i32, i32) {
    %c0_i32 = arith.constant 0 : i32
    %c0_i32_0 = arith.constant 0 : i32
    return %arg0, %c0_i32 : i32, i32
  }
  func.func @transform_1(%arg0: i32) -> (i32, i32) {
    %c0_i32 = arith.constant 0 : i32
    %c0_i32_0 = arith.constant 0 : i32
    %c0_i32_1 = arith.constant 0 : i32
    return %c0_i32, %c0_i32_0 : i32, i32
  }
  func.func @transform_2(%arg0: i32) -> (i32, i32) {
    %c0_i32 = arith.constant 0 : i32
    %c0_i32_0 = arith.constant 0 : i32
    %c0_i32_1 = arith.constant 0 : i32
    return %c0_i32, %c0_i32_0 : i32, i32
  }
  func.func @transform_3(%arg0: i32) -> (i32, i32) {
    %c0_i32 = arith.constant 0 : i32
    %c0_i32_0 = arith.constant 0 : i32
    %c0_i32_1 = arith.constant 0 : i32
    return %c0_i32, %c0_i32_0 : i32, i32
  }
  func.func @transform_4(%arg0: i32) -> (i32, i32) {
    %c0_i32 = arith.constant 0 : i32
    %c0_i32_0 = arith.constant 0 : i32
    %c0_i32_1 = arith.constant 0 : i32
    return %c0_i32, %c0_i32_0 : i32, i32
  }
  func.func @transform_5(%arg0: i32) -> (i32, i32) {
    %c0_i32 = arith.constant 0 : i32
    %c0_i32_0 = arith.constant 0 : i32
    %c0_i32_1 = arith.constant 0 : i32
    return %c0_i32, %c0_i32_0 : i32, i32
  }
  func.func @transform_6(%arg0: i32) -> (i32, i32) {
    %c0_i32 = arith.constant 0 : i32
    %c0_i32_0 = arith.constant 0 : i32
    %c0_i32_1 = arith.constant 0 : i32
    return %c0_i32, %c0_i32_0 : i32, i32
  }
  func.func @transform_7(%arg0: i32) -> (i32, i32) {
    %c0_i32 = arith.constant 0 : i32
    %c0_i32_0 = arith.constant 0 : i32
    return %arg0, %c0_i32 : i32, i32
  }
}

module attributes {stable_mosaic.version = 11 : i64} {
  func.func @mlp_kernel(%arg0: i32, %arg1: memref<256x32xbf16, #tpu.memory_space<vmem>>, %arg2: memref<32x128xbf16, #tpu.memory_space<vmem>>, %arg3: memref<1x128xf32, #tpu.memory_space<vmem>>, %arg4: memref<128x128xbf16, #tpu.memory_space<vmem>>, %arg5: memref<1x128xf32, #tpu.memory_space<vmem>>, %arg6: memref<128x128xbf16, #tpu.memory_space<vmem>>, %arg7: memref<1x128xf32, #tpu.memory_space<vmem>>, %arg8: memref<256x128xf32, #tpu.memory_space<vmem>>) attributes {dimension_semantics = [#tpu.dimension_semantics<parallel>], iteration_bounds = array<i64: 1>, scalar_prefetch = 0 : i64, scratch_operands = 0 : i64, tpu.core_type = #tpu.core_type<tc>, window_params = [{transform_indices = @transform_0, window_bounds = array<i64: 256, 32>}, {pipeline_mode = #tpu.pipeline_mode<synchronous>, transform_indices = @transform_1, window_bounds = array<i64: 32, 128>}, {pipeline_mode = #tpu.pipeline_mode<synchronous>, transform_indices = @transform_2, window_bounds = array<i64: 1, 128>}, {pipeline_mode = #tpu.pipeline_mode<synchronous>, transform_indices = @transform_3, window_bounds = array<i64: 128, 128>}, {pipeline_mode = #tpu.pipeline_mode<synchronous>, transform_indices = @transform_4, window_bounds = array<i64: 1, 128>}, {pipeline_mode = #tpu.pipeline_mode<synchronous>, transform_indices = @transform_5, window_bounds = array<i64: 128, 128>}, {pipeline_mode = #tpu.pipeline_mode<synchronous>, transform_indices = @transform_6, window_bounds = array<i64: 1, 128>}, {transform_indices = @transform_7, window_bounds = array<i64: 256, 128>}]} {
    %c0 = arith.constant 0 : index
    %c0_0 = arith.constant 0 : index
    %0 = vector.load %arg1[%c0, %c0_0] : memref<256x32xbf16, #tpu.memory_space<vmem>>, vector<256x32xbf16>
    %c0_1 = arith.constant 0 : index
    %c0_2 = arith.constant 0 : index
    %1 = vector.load %arg2[%c0_1, %c0_2] : memref<32x128xbf16, #tpu.memory_space<vmem>>, vector<32x128xbf16>
    %cst = arith.constant dense<0.000000e+00> : vector<256x128xf32>
    %2 = tpu.matmul %0, %1, %cst {dimension_numbers = #tpu.dot_dimension_numbers<[1], [0], [0], [1], [0, 0, 1, 1], [], []>} : vector<256x32xbf16>, vector<32x128xbf16>, vector<256x128xf32> -> vector<256x128xf32>
    %c0_3 = arith.constant 0 : index
    %c0_4 = arith.constant 0 : index
    %3 = vector.load %arg3[%c0_3, %c0_4] : memref<1x128xf32, #tpu.memory_space<vmem>>, vector<1x128xf32>
    %4 = vector.broadcast %3 : vector<1x128xf32> to vector<256x128xf32>
    %5 = arith.addf %2, %4 : vector<256x128xf32>
    %cst_5 = arith.constant 0.000000e+00 : f32
    %6 = vector.broadcast %cst_5 : f32 to vector<256x128xf32>
    %7 = arith.maximumf %5, %6 : vector<256x128xf32>
    %8 = arith.truncf %7 : vector<256x128xf32> to vector<256x128xbf16>
    %c0_6 = arith.constant 0 : index
    %c0_7 = arith.constant 0 : index
    %9 = vector.load %arg4[%c0_6, %c0_7] : memref<128x128xbf16, #tpu.memory_space<vmem>>, vector<128x128xbf16>
    %cst_8 = arith.constant dense<0.000000e+00> : vector<256x128xf32>
    %10 = tpu.matmul %8, %9, %cst_8 {dimension_numbers = #tpu.dot_dimension_numbers<[1], [0], [0], [1], [0, 0, 1, 1], [], []>} : vector<256x128xbf16>, vector<128x128xbf16>, vector<256x128xf32> -> vector<256x128xf32>
    %c0_9 = arith.constant 0 : index
    %c0_10 = arith.constant 0 : index
    %11 = vector.load %arg5[%c0_9, %c0_10] : memref<1x128xf32, #tpu.memory_space<vmem>>, vector<1x128xf32>
    %12 = vector.broadcast %11 : vector<1x128xf32> to vector<256x128xf32>
    %13 = arith.addf %10, %12 : vector<256x128xf32>
    %cst_11 = arith.constant 0.000000e+00 : f32
    %14 = vector.broadcast %cst_11 : f32 to vector<256x128xf32>
    %15 = arith.maximumf %13, %14 : vector<256x128xf32>
    %16 = arith.truncf %15 : vector<256x128xf32> to vector<256x128xbf16>
    %c0_12 = arith.constant 0 : index
    %c0_13 = arith.constant 0 : index
    %17 = vector.load %arg6[%c0_12, %c0_13] : memref<128x128xbf16, #tpu.memory_space<vmem>>, vector<128x128xbf16>
    %cst_14 = arith.constant dense<0.000000e+00> : vector<256x128xf32>
    %18 = tpu.matmul %16, %17, %cst_14 {dimension_numbers = #tpu.dot_dimension_numbers<[1], [0], [0], [1], [0, 0, 1, 1], [], []>} : vector<256x128xbf16>, vector<128x128xbf16>, vector<256x128xf32> -> vector<256x128xf32>
    %c0_15 = arith.constant 0 : index
    %c0_16 = arith.constant 0 : index
    %19 = vector.load %arg7[%c0_15, %c0_16] : memref<1x128xf32, #tpu.memory_space<vmem>>, vector<1x128xf32>
    %20 = vector.broadcast %19 : vector<1x128xf32> to vector<256x128xf32>
    %21 = arith.addf %18, %20 : vector<256x128xf32>
    %c0_17 = arith.constant 0 : index
    %c0_18 = arith.constant 0 : index
    %22 = vector.load %arg8[%c0_17, %c0_18] : memref<256x128xf32, #tpu.memory_space<vmem>>, vector<256x128xf32>
    tpu.vector_store %arg8[%c0_17, %c0_18], %21 {strides = array<i32>} : memref<256x128xf32, #tpu.memory_space<vmem>>, vector<256x128xf32>,
    return
  }
  func.func @transform_0(%arg0: i32) -> (i32, i32) {
    %c0_i32 = arith.constant 0 : i32
    %c0_i32_0 = arith.constant 0 : i32
    return %arg0, %c0_i32 : i32, i32
  }
  func.func @transform_1(%arg0: i32) -> (i32, i32) {
    %c0_i32 = arith.constant 0 : i32
    %c0_i32_0 = arith.constant 0 : i32
    %c0_i32_1 = arith.constant 0 : i32
    return %c0_i32, %c0_i32_0 : i32, i32
  }
  func.func @transform_2(%arg0: i32) -> (i32, i32) {
    %c0_i32 = arith.constant 0 : i32
    %c0_i32_0 = arith.constant 0 : i32
    %c0_i32_1 = arith.constant 0 : i32
    return %c0_i32, %c0_i32_0 : i32, i32
  }
  func.func @transform_3(%arg0: i32) -> (i32, i32) {
    %c0_i32 = arith.constant 0 : i32
    %c0_i32_0 = arith.constant 0 : i32
    %c0_i32_1 = arith.constant 0 : i32
    return %c0_i32, %c0_i32_0 : i32, i32
  }
  func.func @transform_4(%arg0: i32) -> (i32, i32) {
    %c0_i32 = arith.constant 0 : i32
    %c0_i32_0 = arith.constant 0 : i32
    %c0_i32_1 = arith.constant 0 : i32
    return %c0_i32, %c0_i32_0 : i32, i32
  }
  func.func @transform_5(%arg0: i32) -> (i32, i32) {
    %c0_i32 = arith.constant 0 : i32
    %c0_i32_0 = arith.constant 0 : i32
    %c0_i32_1 = arith.constant 0 : i32
    return %c0_i32, %c0_i32_0 : i32, i32
  }
  func.func @transform_6(%arg0: i32) -> (i32, i32) {
    %c0_i32 = arith.constant 0 : i32
    %c0_i32_0 = arith.constant 0 : i32
    %c0_i32_1 = arith.constant 0 : i32
    return %c0_i32, %c0_i32_0 : i32, i32
  }
  func.func @transform_7(%arg0: i32) -> (i32, i32) {
    %c0_i32 = arith.constant 0 : i32
    %c0_i32_0 = arith.constant 0 : i32
    return %arg0, %c0_i32 : i32, i32
  }
}

</mosaic_0001>

<bundles_post_ra>
// kernel: spectral_norm_classifier_forward.1
= control target key start
LH: loop header
LB: loop body
LE: loop exit
PB: predicated region body
PF: predicated region fallthrough
CT: control target
= control target key end

     0   :  { %vm162_vm0 = vcmask 261120   ;;  %s1628_s1 = inlined_call_operand.vmem [shape: bf16[32,128], index: 1, kind: input, shape index: {}]   ;;  %s1629_s0 = inlined_call_operand.vmem [shape: bf16[256,32], index: 0, kind: input, shape index: {}]   ;;  %s1630_s3 = inlined_call_operand.vmem [shape: bf16[128,128], index: 3, kind: input, shape index: {}]   ;;  %s1631_s5 = inlined_call_operand.vmem [shape: bf16[128,128], index: 5, kind: input, shape index: {}]   ;;  %s1632_s2 = inlined_call_operand.vmem [shape: f32[1,128], index: 2, kind: input, shape index: {}]   ;;  %s1633_s4 = inlined_call_operand.vmem [shape: f32[1,128], index: 4, kind: input, shape index: {}]   ;;  %s1634_s6 = inlined_call_operand.vmem [shape: f32[1,128], index: 6, kind: input, shape index: {}]   ;;  %s1635_s7 = inlined_call_operand.vmem [shape: f32[256,128], index: 7, kind: output, shape index: {}]  }
   0x1   :  { %v1223_v0 = vld [vmem:[%s1628_s1] sm:$0xff]   ;;  %v1224_v1 = vld [vmem:[%s1628_s1 + $0x8] sm:$0xff]   ;;  %v1227_v4 = vld [vmem:[%s1629_s0 + $0x10] sm:$0xff]  }
   0x2   :  { %1087 = vmatprep.subr.bf16.mxu0 %v1223_v0  ;;  %v1225_v2 = vld [vmem:[%s1629_s0] sm:$0xff]   ;;  %1219 = vmatprep.subr.bf16.mxu1 %v1223_v0  ;;  %v1226_v3 = vld [vmem:[%s1629_s0 + $0x8] sm:$0xff]   ;;  %v1235_v7 = vld [vmem:[%s1629_s0 + $0x50] sm:$0xff]  }
   0x3   :  { %1088 = vmatpush3.bf16.msra.mxu0 %v1223_v0  ;;  %1221 = vmatpush3.bf16.msra.mxu1 %v1223_v0  ;;  %v1233_v5 = vld [vmem:[%s1629_s0 + $0x40] sm:$0xff]   ;;  %v1234_v6 = vld [vmem:[%s1629_s0 + $0x48] sm:$0xff]   ;;  %v1228_v8 = vld [vmem:[%s1629_s0 + $0x18] sm:$0xff]  }
   0x4   :  { %1089 = vmatprep.subr.bf16.mxu0 %v1224_v1  ;;  %1091 = vmatprep.mubr.msk.bf16.mxu0 %vm162_vm0, %v1225_v2  ;;  %v1229_v9 = vld [vmem:[%s1629_s0 + $0x20] sm:$0xff]   ;;  %v1236_v10 = vld [vmem:[%s1629_s0 + $0x58] sm:$0xff]   ;;  %v1242_v13 = vld [vmem:[%s1630_s3 + $0x8] sm:$0xff]  }
   0x5   :  { %1220 = vmatprep.subr.bf16.mxu1 %v1224_v1  ;;  %1107 = vmatprep.mubr.msk.bf16.mxu1 %vm162_vm0, %v1233_v5  ;;  %v1237_v11 = vld [vmem:[%s1629_s0 + $0x60] sm:$0xff]   ;;  %v1230_v14 = vld [vmem:[%s1629_s0 + $0x28] sm:$0xff]   ;;  %v1231_v15 = vld [vmem:[%s1629_s0 + $0x30] sm:$0xff]  }
   0x6   :  { %v1241_v12 = vld [vmem:[%s1630_s3] sm:$0xff]   ;;  %v1243_v16 = vld [vmem:[%s1630_s3 + $0x10] sm:$0xff]   ;;  %v1238_v17 = vld [vmem:[%s1629_s0 + $0x68] sm:$0xff]  }
   0x7   :  { %1090 = vmatpush3.bf16.msra.mxu0 %v1224_v1  ;;  %1222 = vmatpush3.bf16.msra.mxu1 %v1224_v1  ;;  %v1239_v18 = vld [vmem:[%s1629_s0 + $0x70] sm:$0xff]   ;;  %v1244_v19 = vld [vmem:[%s1630_s3 + $0x18] sm:$0xff]   ;;  %v1245_v21 = vld [vmem:[%s1630_s3 + $0x20] sm:$0xff]  }
   0x8   :  { %1123 = vmatprep.subr.bf16.mxu1 %v1241_v12  ;;  %v1232_v20 = vld [vmem:[%s1629_s0 + $0x38] sm:$0xff]   ;;  %v1246_v23 = vld [vmem:[%s1630_s3 + $0x28] sm:$0xff]   ;;  %v1247_v24 = vld [vmem:[%s1630_s3 + $0x30] sm:$0xff]  }
   0x9   :  { %v1240_v22 = vld [vmem:[%s1629_s0 + $0x78] sm:$0xff]   ;;  %v1249_v26 = vld [vmem:[%s1631_s5] sm:$0xff]   ;;  %v1250_v27 = vld [vmem:[%s1631_s5 + $0x8] sm:$0xff]  }
   0xa   :  { %1092 = vmatmul.mubr.msk.bf16.vlgmr.msra.gmra.mrb[0].mxu0 %vm162_vm0, %v1226_v3  ;;  %1108 = vmatmul.mubr.msk.bf16.vlgmr.msra.gmra.mrb[0].mxu1 %vm162_vm0, %v1234_v6  ;;  %v1248_v25 = vld [vmem:[%s1630_s3 + $0x38] sm:$0xff]   ;;  %v1251_v28 = vld [vmem:[%s1631_s5 + $0x10] sm:$0xff]   ;;  %v1253_v30 = vld [vmem:[%s1631_s5 + $0x20] sm:$0xff]  }
   0xb   :  { %1095 = vmatprep.mubr.msk.bf16.mxu0 %vm162_vm0, %v1227_v4  ;;  %1111 = vmatprep.mubr.msk.bf16.mxu1 %vm162_vm0, %v1235_v7  ;;  %v1252_v29 = vld [vmem:[%s1631_s5 + $0x18] sm:$0xff]   ;;  %v1254_v31 = vld [vmem:[%s1631_s5 + $0x28] sm:$0xff]   ;;  %v1412_v32 = vld [vmem:[%s1632_s2] ss:$0 sm:$0xff] }
   0xc   :  { %1124 = vmatpush3.bf16.msra.mxu1 %v1241_v12  ;;  %1171 = vmatprep.subr.bf16.mxu0 %v1249_v26 }
   0xd   :  { %1125 = vmatprep.subr.bf16.mxu1 %v1242_v13  ;;  %1172 = vmatpush3.bf16.msra.mxu0 %v1249_v26 }
   0xe   :  { %1173 = vmatprep.subr.bf16.mxu0 %v1250_v27 }
  0x10   :  { %1126 = vmatpush3.bf16.msra.mxu1 %v1242_v13 }
  0x11   :  { %1127 = vmatprep.subr.bf16.mxu1 %v1243_v16  ;;  %1174 = vmatpush3.bf16.msra.mxu0 %v1250_v27 }
  0x12   :  { %1096 = vmatmul.mubr.msk.bf16.gmra.mrb[4].mxu0 %vm162_vm0, %v1228_v8  ;;  %1112 = vmatmul.mubr.msk.bf16.gmra.mrb[4].mxu1 %vm162_vm0, %v1236_v10 }
  0x13   :  { %1099 = vmatprep.mubr.msk.bf16.mxu0 %vm162_vm0, %v1229_v9  ;;  %1115 = vmatprep.mubr.msk.bf16.mxu1 %vm162_vm0, %v1237_v11 }
  0x14   :  { %1128 = vmatpush3.bf16.msra.mxu1 %v1243_v16  ;;  %1175 = vmatprep.subr.bf16.mxu0 %v1251_v28 }
  0x15   :  { %1129 = vmatprep.subr.bf16.mxu1 %v1244_v19  ;;  %1176 = vmatpush3.bf16.msra.mxu0 %v1251_v28 }
  0x16   :  { %1177 = vmatprep.subr.bf16.mxu0 %v1252_v29 }
  0x18   :  { %1130 = vmatpush3.bf16.msra.mxu1 %v1244_v19 }
  0x19   :  { %1131 = vmatprep.subr.bf16.mxu1 %v1245_v21  ;;  %1178 = vmatpush3.bf16.msra.mxu0 %v1252_v29 }
  0x1a   :  { %1100 = vmatmul.mubr.msk.bf16.gmra.mrb[8].mxu0 %vm162_vm0, %v1230_v14  ;;  %1116 = vmatmul.mubr.msk.bf16.gmra.mrb[8].mxu1 %vm162_vm0, %v1238_v17 }
  0x1b   :  { %1103 = vmatprep.mubr.msk.bf16.mxu0 %vm162_vm0, %v1231_v15  ;;  %1119 = vmatprep.mubr.msk.bf16.mxu1 %vm162_vm0, %v1239_v18 }
  0x1c   :  { %1132 = vmatpush3.bf16.msra.mxu1 %v1245_v21  ;;  %1179 = vmatprep.subr.bf16.mxu0 %v1253_v30 }
  0x1d   :  { %1133 = vmatprep.subr.bf16.mxu1 %v1246_v23  ;;  %1180 = vmatpush3.bf16.msra.mxu0 %v1253_v30 }
  0x1e   :  { %1181 = vmatprep.subr.bf16.mxu0 %v1254_v31 }
  0x20   :  { %1134 = vmatpush3.bf16.msra.mxu1 %v1246_v23 }
  0x21   :  { %1135 = vmatprep.subr.bf16.mxu1 %v1247_v24  ;;  %1182 = vmatpush3.bf16.msra.mxu0 %v1254_v31 }
  0x22   :  { %1104 = vmatmul.mubr.msk.bf16.gmra.mrb[12].mxu0 %vm162_vm0, %v1232_v20  ;;  %1120 = vmatmul.mubr.msk.bf16.gmra.mrb[12].mxu1 %vm162_vm0, %v1240_v22 }
  0x24   :  { %1136 = vmatpush3.bf16.msra.mxu1 %v1247_v24 }
  0x25   :  { %1137 = vmatprep.subr.bf16.mxu1 %v1248_v25 }
  0x28   :  { %1138 = vmatpush3.bf16.msra.mxu1 %v1248_v25 }
  0xdd   :  { %v1093_v33 = vpop.f32.mrb[0].mxu0  ;;  %v1109_v40 = vpop.f32.mrb[0].mxu1 }
  0xde   :  { %v254_v34 = vadd.f32 %v1093_v33, %v1412_v32  ;;  %v245_v35 = vpop.f32.mrb[1].mxu0  ;;  %v318_v42 = vadd.f32 %v1109_v40, %v1412_v32  ;;  %v309_v43 = vpop.f32.mrb[1].mxu1 }
  0xdf   :  { %v246_v36 = vadd.f32 %v1412_v32, %v245_v35  ;;  %v1094_v37 = vpop.f32.mrb[2].mxu0  ;;  %v310_v46 = vadd.f32 %v1412_v32, %v309_v43  ;;  %v1110_v47 = vpop.f32.mrb[2].mxu1 }
  0xe0   :  { %v257_v38 = vadd.f32 %v1094_v37, %v1412_v32  ;;  %v248_v39 = vpop.f32.mrb[3].mxu0  ;;  %v374_v44 = vmax.f32 %v254_v34, 0.0  ;;  %v390_v50 = vmax.f32 %v318_v42, 0.0  ;;  %v321_v51 = vadd.f32 %v1110_v47, %v1412_v32  ;;  %v312_v52 = vpop.f32.mrb[3].mxu1 }
  0xe1   :  { %v249_v41 = vadd.f32 %v1412_v32, %v248_v39  ;;  %v372_v48 = vmax.f32 %v246_v36, 0.0  ;;  %v388_v54 = vmax.f32 %v310_v46, 0.0  ;;  %v313_v55 = vadd.f32 %v1412_v32, %v312_v52 }
  0xe2   :  { %v375_v45 = vmax.f32 %v257_v38, 0.0  ;;  %v391_v58 = vmax.f32 %v321_v51, 0.0 }
  0xe3   :  { %v373_v49 = vmax.f32 %v249_v41, 0.0  ;;  %v389_v61 = vmax.f32 %v313_v55, 0.0 }
  0xe4   :  { %v405_v53 = vpack.c.bf16 %v375_v45, %v374_v44  ;;  %v1424_v0 = vpack.c.bf16 %v391_v58, %v390_v50 }
  0xe5   :  { %v404_v56 = vpack.c.bf16 %v373_v49, %v372_v48  ;;  %v1097_v57 = vpop.f32.mrb[4].mxu0  ;;  %v1427_v3 = vpack.c.bf16 %v389_v61, %v388_v54  ;;  %v1113_v4 = vpop.f32.mrb[4].mxu1 }
  0xe6   :  { %v270_v59 = vadd.f32 %v1097_v57, %v1412_v32  ;;  %v261_v60 = vpop.f32.mrb[5].mxu0  ;;  %v334_v6 = vadd.f32 %v1113_v4, %v1412_v32  ;;  %v325_v7 = vpop.f32.mrb[5].mxu1 }
  0xe7   :  { %v262_v62 = vadd.f32 %v1412_v32, %v261_v60  ;;  %v1098_v63 = vpop.f32.mrb[6].mxu0  ;;  %1139 = vmatprep.mubr.bf16.mxu1 %v404_v56  ;;  %v326_v10 = vadd.f32 %v1412_v32, %v325_v7  ;;  %v1114_v11 = vpop.f32.mrb[6].mxu1 }
  0xe8   :  { %v273_v1 = vadd.f32 %v1098_v63, %v1412_v32  ;;  %v264_v2 = vpop.f32.mrb[7].mxu0  ;;  %1140 = vmatmul.mubr.bf16.vlgmr.msra.gmra.mrb[16].mxu1 %v405_v53  ;;  %v378_v8 = vmax.f32 %v270_v59, 0.0  ;;  %v394_v14 = vmax.f32 %v334_v6, 0.0  ;;  %v337_v15 = vadd.f32 %v1114_v11, %v1412_v32  ;;  %v328_v16 = vpop.f32.mrb[7].mxu1 }
  0xe9   :  { %v265_v5 = vadd.f32 %v1412_v32, %v264_v2  ;;  %v376_v12 = vmax.f32 %v262_v62, 0.0  ;;  %v392_v18 = vmax.f32 %v326_v10, 0.0  ;;  %v329_v19 = vadd.f32 %v1412_v32, %v328_v16 }
  0xea   :  { %v379_v9 = vmax.f32 %v273_v1, 0.0  ;;  %v395_v22 = vmax.f32 %v337_v15, 0.0 }
  0xeb   :  { %v377_v13 = vmax.f32 %v265_v5, 0.0  ;;  %v393_v25 = vmax.f32 %v329_v19, 0.0 }
  0xec   :  { %v407_v17 = vpack.c.bf16 %v379_v9, %v378_v8  ;;  %v415_v28 = vpack.c.bf16 %v395_v22, %v394_v14 }
  0xed   :  { %v406_v20 = vpack.c.bf16 %v377_v13, %v376_v12  ;;  %v1101_v21 = vpop.f32.mrb[8].mxu0  ;;  %v414_v31 = vpack.c.bf16 %v393_v25, %v392_v18  ;;  %v1117_v33 = vpop.f32.mrb[8].mxu1 }
  0xee   :  { %v286_v23 = vadd.f32 %v1101_v21, %v1412_v32  ;;  %v277_v24 = vpop.f32.mrb[9].mxu0  ;;  %v350_v35 = vadd.f32 %v1117_v33, %v1412_v32  ;;  %v341_v36 = vpop.f32.mrb[9].mxu1 }
  0xef   :  { %v278_v26 = vadd.f32 %v1412_v32, %v277_v24  ;;  %v1102_v27 = vpop.f32.mrb[10].mxu0  ;;  %1143 = vmatprep.mubr.bf16.mxu1 %v406_v20  ;;  %v342_v39 = vadd.f32 %v1412_v32, %v341_v36  ;;  %v1118_v40 = vpop.f32.mrb[10].mxu1  ;;  %v1256_v20 = vld [vmem:[%s1631_s5 + $0x38] sm:$0xff]  }
  0xf0   :  { %v289_v29 = vadd.f32 %v1102_v27, %v1412_v32  ;;  %v280_v30 = vpop.f32.mrb[11].mxu0  ;;  %1144 = vmatmul.mubr.bf16.gmra.mrb[20].mxu1 %v407_v17  ;;  %v382_v37 = vmax.f32 %v286_v23, 0.0  ;;  %v398_v43 = vmax.f32 %v350_v35, 0.0  ;;  %v353_v44 = vadd.f32 %v1118_v40, %v1412_v32  ;;  %v344_v45 = vpop.f32.mrb[11].mxu1 }
  0xf1   :  { %v281_v34 = vadd.f32 %v1412_v32, %v280_v30  ;;  %v380_v41 = vmax.f32 %v278_v26, 0.0  ;;  %v396_v47 = vmax.f32 %v342_v39, 0.0  ;;  %v345_v48 = vadd.f32 %v1412_v32, %v344_v45 }
  0xf2   :  { %v383_v38 = vmax.f32 %v289_v29, 0.0  ;;  %v399_v51 = vmax.f32 %v353_v44, 0.0 }
  0xf3   :  { %v381_v42 = vmax.f32 %v281_v34, 0.0  ;;  %v397_v54 = vmax.f32 %v345_v48, 0.0 }
  0xf4   :  { %v409_v46 = vpack.c.bf16 %v383_v38, %v382_v37  ;;  %v417_v57 = vpack.c.bf16 %v399_v51, %v398_v43 }
  0xf5   :  { %v408_v49 = vpack.c.bf16 %v381_v42, %v380_v41  ;;  %v1105_v50 = vpop.f32.mrb[12].mxu0  ;;  %v416_v60 = vpack.c.bf16 %v397_v54, %v396_v47  ;;  %v1121_v61 = vpop.f32.mrb[12].mxu1 }
  0xf6   :  { %v302_v52 = vadd.f32 %v1105_v50, %v1412_v32  ;;  %v293_v53 = vpop.f32.mrb[13].mxu0  ;;  %v366_v63 = vadd.f32 %v1121_v61, %v1412_v32  ;;  %v357_v1 = vpop.f32.mrb[13].mxu1 }
  0xf7   :  { %v294_v55 = vadd.f32 %v1412_v32, %v293_v53  ;;  %v1106_v56 = vpop.f32.mrb[14].mxu0  ;;  %1147 = vmatprep.mubr.bf16.mxu1 %v408_v49  ;;  %v358_v5 = vadd.f32 %v1412_v32, %v357_v1  ;;  %v1122_v6 = vpop.f32.mrb[14].mxu1 }
  0xf8   :  { %v305_v58 = vadd.f32 %v1106_v56, %v1412_v32  ;;  %v296_v59 = vpop.f32.mrb[15].mxu0  ;;  %1148 = vmatmul.mubr.bf16.gmra.mrb[24].mxu1 %v409_v46  ;;  %v386_v2 = vmax.f32 %v302_v52, 0.0  ;;  %v402_v9 = vmax.f32 %v366_v63, 0.0  ;;  %v369_v10 = vadd.f32 %v1122_v6, %v1412_v32  ;;  %v360_v11 = vpop.f32.mrb[15].mxu1 }
  0xf9   :  { %v297_v62 = vadd.f32 %v1412_v32, %v296_v59  ;;  %v384_v7 = vmax.f32 %v294_v55, 0.0  ;;  %v400_v13 = vmax.f32 %v358_v5, 0.0  ;;  %v361_v14 = vadd.f32 %v1412_v32, %v360_v11  ;;  %v1255_v32 = vld [vmem:[%s1631_s5 + $0x30] sm:$0xff]  }
  0xfa   :  { %v387_v4 = vmax.f32 %v305_v58, 0.0  ;;  %v403_v16 = vmax.f32 %v369_v10, 0.0  ;;  %1183 = vmatprep.subr.bf16.mxu0 %v1255_v32 }
  0xfb   :  { %v385_v8 = vmax.f32 %v297_v62, 0.0  ;;  %v401_v17 = vmax.f32 %v361_v14, 0.0  ;;  %1184 = vmatpush3.bf16.msra.mxu0 %v1255_v32 }
  0xfc   :  { %v411_v12 = vpack.c.bf16 %v387_v4, %v386_v2  ;;  %v419_v18 = vpack.c.bf16 %v403_v16, %v402_v9  ;;  %1185 = vmatprep.subr.bf16.mxu0 %v1256_v20 }
  0xfd   :  { %v410_v15 = vpack.c.bf16 %v385_v8, %v384_v7  ;;  %v418_v19 = vpack.c.bf16 %v401_v17, %v400_v13 }
  0xff   :  { %1151 = vmatprep.mubr.bf16.mxu1 %v410_v15  ;;  %1186 = vmatpush3.bf16.msra.mxu0 %v1256_v20 }
 0x100   :  { %1152 = vmatmul.mubr.bf16.gmra.mrb[28].mxu1 %v411_v12 }
 0x101   :  { %1155 = vmatprep.mubr.bf16.mxu1 %v1427_v3 }
 0x108   :  { %1156 = vmatmul.mubr.bf16.gmra.mrb[32].mxu1 %v1424_v0  ;;  %v1461_v0 = vld [vmem:[%s1633_s4] ss:$0 sm:$0xff] }
 0x109   :  { %1159 = vmatprep.mubr.bf16.mxu1 %v414_v31 }
 0x110   :  { %1160 = vmatmul.mubr.bf16.gmra.mrb[36].mxu1 %v415_v28 }
 0x111   :  { %1163 = vmatprep.mubr.bf16.mxu1 %v416_v60 }
 0x118   :  { %1164 = vmatmul.mubr.bf16.gmra.mrb[40].mxu1 %v417_v57 }
 0x119   :  { %1167 = vmatprep.mubr.bf16.mxu1 %v418_v19 }
 0x120   :  { %1168 = vmatmul.mubr.bf16.gmra.mrb[44].mxu1 %v419_v18 }
 0x1bb   :  { %v1141_v3 = vpop.f32.mrb[16].mxu1 }
 0x1bc   :  { %v534_v21 = vadd.f32 %v1141_v3, %v1461_v0  ;;  %v525_v22 = vpop.f32.mrb[17].mxu1 }
 0x1bd   :  { %v526_v23 = vadd.f32 %v1461_v0, %v525_v22  ;;  %v1142_v24 = vpop.f32.mrb[18].mxu1 }
 0x1be   :  { %v537_v25 = vadd.f32 %v1142_v24, %v1461_v0  ;;  %v528_v26 = vpop.f32.mrb[19].mxu1  ;;  %v654_v28 = vmax.f32 %v534_v21, 0.0 }
 0x1bf   :  { %v529_v27 = vadd.f32 %v1461_v0, %v528_v26  ;;  %v652_v30 = vmax.f32 %v526_v23, 0.0 }
 0x1c0   :  { %v655_v29 = vmax.f32 %v537_v25, 0.0 }
 0x1c1   :  { %v653_v31 = vmax.f32 %v529_v27, 0.0 }
 0x1c2   :  { %v685_v33 = vpack.c.bf16 %v655_v29, %v654_v28 }
 0x1c3   :  { %v684_v34 = vpack.c.bf16 %v653_v31, %v652_v30  ;;  %v1145_v35 = vpop.f32.mrb[20].mxu1 }
 0x1c4   :  { %v550_v36 = vadd.f32 %v1145_v35, %v1461_v0  ;;  %v541_v37 = vpop.f32.mrb[21].mxu1 }
 0x1c5   :  { %v542_v38 = vadd.f32 %v1461_v0, %v541_v37  ;;  %v1146_v39 = vpop.f32.mrb[22].mxu1  ;;  %1187 = vmatprep.mubr.bf16.mxu0 %v684_v34 }
 0x1c6   :  { %v553_v40 = vadd.f32 %v1146_v39, %v1461_v0  ;;  %v544_v41 = vpop.f32.mrb[23].mxu1  ;;  %1188 = vmatmul.mubr.bf16.vlgmr.msra.gmra.mrb[16].mxu0 %v685_v33  ;;  %v658_v43 = vmax.f32 %v550_v36, 0.0 }
 0x1c7   :  { %v545_v42 = vadd.f32 %v1461_v0, %v544_v41  ;;  %v656_v45 = vmax.f32 %v542_v38, 0.0 }
 0x1c8   :  { %v659_v44 = vmax.f32 %v553_v40, 0.0 }
 0x1c9   :  { %v657_v46 = vmax.f32 %v545_v42, 0.0 }
 0x1ca   :  { %v687_v47 = vpack.c.bf16 %v659_v44, %v658_v43 }
 0x1cb   :  { %v686_v48 = vpack.c.bf16 %v657_v46, %v656_v45  ;;  %v1149_v49 = vpop.f32.mrb[24].mxu1 }
 0x1cc   :  { %v566_v50 = vadd.f32 %v1149_v49, %v1461_v0  ;;  %v557_v51 = vpop.f32.mrb[25].mxu1 }
 0x1cd   :  { %v558_v52 = vadd.f32 %v1461_v0, %v557_v51  ;;  %v1150_v53 = vpop.f32.mrb[26].mxu1  ;;  %1191 = vmatprep.mubr.bf16.mxu0 %v686_v48 }
 0x1ce   :  { %v569_v54 = vadd.f32 %v1150_v53, %v1461_v0  ;;  %v560_v55 = vpop.f32.mrb[27].mxu1  ;;  %1192 = vmatmul.mubr.bf16.gmra.mrb[20].mxu0 %v687_v47  ;;  %v662_v57 = vmax.f32 %v566_v50, 0.0 }
 0x1cf   :  { %v561_v56 = vadd.f32 %v1461_v0, %v560_v55  ;;  %v660_v59 = vmax.f32 %v558_v52, 0.0 }
 0x1d0   :  { %v663_v58 = vmax.f32 %v569_v54, 0.0 }
 0x1d1   :  { %v661_v60 = vmax.f32 %v561_v56, 0.0 }
 0x1d2   :  { %v689_v61 = vpack.c.bf16 %v663_v58, %v662_v57 }
 0x1d3   :  { %v688_v62 = vpack.c.bf16 %v661_v60, %v660_v59  ;;  %v1153_v63 = vpop.f32.mrb[28].mxu1 }
 0x1d4   :  { %v582_v1 = vadd.f32 %v1153_v63, %v1461_v0  ;;  %v573_v2 = vpop.f32.mrb[29].mxu1 }
 0x1d5   :  { %v574_v4 = vadd.f32 %v1461_v0, %v573_v2  ;;  %v1154_v5 = vpop.f32.mrb[30].mxu1  ;;  %1195 = vmatprep.mubr.bf16.mxu0 %v688_v62 }
 0x1d6   :  { %v585_v6 = vadd.f32 %v1154_v5, %v1461_v0  ;;  %v576_v7 = vpop.f32.mrb[31].mxu1  ;;  %1196 = vmatmul.mubr.bf16.gmra.mrb[24].mxu0 %v689_v61  ;;  %v666_v9 = vmax.f32 %v582_v1, 0.0 }
 0x1d7   :  { %v577_v8 = vadd.f32 %v1461_v0, %v576_v7  ;;  %v664_v11 = vmax.f32 %v574_v4, 0.0 }
 0x1d8   :  { %v667_v10 = vmax.f32 %v585_v6, 0.0 }
 0x1d9   :  { %v665_v12 = vmax.f32 %v577_v8, 0.0  ;;  %v1498_v8 = vld [vmem:[%s1634_s6] ss:$0 sm:$0xff] }
 0x1da   :  { %v691_v13 = vpack.c.bf16 %v667_v10, %v666_v9 }
 0x1db   :  { %v690_v14 = vpack.c.bf16 %v665_v12, %v664_v11  ;;  %v1157_v15 = vpop.f32.mrb[32].mxu1 }
 0x1dc   :  { %v598_v16 = vadd.f32 %v1157_v15, %v1461_v0  ;;  %v589_v17 = vpop.f32.mrb[33].mxu1 }
 0x1dd   :  { %v590_v18 = vadd.f32 %v1461_v0, %v589_v17  ;;  %v1158_v19 = vpop.f32.mrb[34].mxu1  ;;  %1199 = vmatprep.mubr.bf16.mxu0 %v690_v14 }
 0x1de   :  { %v601_v32 = vadd.f32 %v1158_v19, %v1461_v0  ;;  %v592_v20 = vpop.f32.mrb[35].mxu1  ;;  %1200 = vmatmul.mubr.bf16.gmra.mrb[28].mxu0 %v691_v13  ;;  %v670_v21 = vmax.f32 %v598_v16, 0.0 }
 0x1df   :  { %v593_v3 = vadd.f32 %v1461_v0, %v592_v20  ;;  %v668_v23 = vmax.f32 %v590_v18, 0.0 }
 0x1e0   :  { %v671_v22 = vmax.f32 %v601_v32, 0.0 }
 0x1e1   :  { %v669_v24 = vmax.f32 %v593_v3, 0.0 }
 0x1e2   :  { %v693_v25 = vpack.c.bf16 %v671_v22, %v670_v21 }
 0x1e3   :  { %v692_v26 = vpack.c.bf16 %v669_v24, %v668_v23  ;;  %v1161_v27 = vpop.f32.mrb[36].mxu1 }
 0x1e4   :  { %v614_v28 = vadd.f32 %v1161_v27, %v1461_v0  ;;  %v605_v29 = vpop.f32.mrb[37].mxu1 }
 0x1e5   :  { %v606_v30 = vadd.f32 %v1461_v0, %v605_v29  ;;  %v1162_v31 = vpop.f32.mrb[38].mxu1  ;;  %1203 = vmatprep.mubr.bf16.mxu0 %v692_v26 }
 0x1e6   :  { %v617_v33 = vadd.f32 %v1162_v31, %v1461_v0  ;;  %v608_v34 = vpop.f32.mrb[39].mxu1  ;;  %1204 = vmatmul.mubr.bf16.gmra.mrb[32].mxu0 %v693_v25  ;;  %v674_v36 = vmax.f32 %v614_v28, 0.0 }
 0x1e7   :  { %v609_v35 = vadd.f32 %v1461_v0, %v608_v34  ;;  %v672_v38 = vmax.f32 %v606_v30, 0.0 }
 0x1e8   :  { %v675_v37 = vmax.f32 %v617_v33, 0.0 }
 0x1e9   :  { %v673_v39 = vmax.f32 %v609_v35, 0.0 }
 0x1ea   :  { %v695_v40 = vpack.c.bf16 %v675_v37, %v674_v36 }
 0x1eb   :  { %v694_v41 = vpack.c.bf16 %v673_v39, %v672_v38  ;;  %v1165_v42 = vpop.f32.mrb[40].mxu1 }
 0x1ec   :  { %v630_v43 = vadd.f32 %v1165_v42, %v1461_v0  ;;  %v621_v44 = vpop.f32.mrb[41].mxu1 }
 0x1ed   :  { %v622_v45 = vadd.f32 %v1461_v0, %v621_v44  ;;  %v1166_v46 = vpop.f32.mrb[42].mxu1  ;;  %1207 = vmatprep.mubr.bf16.mxu0 %v694_v41 }
 0x1ee   :  { %v633_v47 = vadd.f32 %v1166_v46, %v1461_v0  ;;  %v624_v48 = vpop.f32.mrb[43].mxu1  ;;  %1208 = vmatmul.mubr.bf16.gmra.mrb[36].mxu0 %v695_v40  ;;  %v678_v50 = vmax.f32 %v630_v43, 0.0 }
 0x1ef   :  { %v625_v49 = vadd.f32 %v1461_v0, %v624_v48  ;;  %v676_v52 = vmax.f32 %v622_v45, 0.0 }
 0x1f0   :  { %v679_v51 = vmax.f32 %v633_v47, 0.0 }
 0x1f1   :  { %v677_v53 = vmax.f32 %v625_v49, 0.0 }
 0x1f2   :  { %v697_v54 = vpack.c.bf16 %v679_v51, %v678_v50 }
 0x1f3   :  { %v696_v55 = vpack.c.bf16 %v677_v53, %v676_v52  ;;  %v1169_v56 = vpop.f32.mrb[44].mxu1 }
 0x1f4   :  { %v646_v57 = vadd.f32 %v1169_v56, %v1461_v0  ;;  %v637_v58 = vpop.f32.mrb[45].mxu1 }
 0x1f5   :  { %v638_v59 = vadd.f32 %v1461_v0, %v637_v58  ;;  %v1170_v60 = vpop.f32.mrb[46].mxu1  ;;  %1211 = vmatprep.mubr.bf16.mxu0 %v696_v55 }
 0x1f6   :  { %v649_v61 = vadd.f32 %v1170_v60, %v1461_v0  ;;  %v640_v62 = vpop.f32.mrb[47].mxu1  ;;  %1212 = vmatmul.mubr.bf16.gmra.mrb[40].mxu0 %v697_v54  ;;  %v682_v1 = vmax.f32 %v646_v57, 0.0 }
 0x1f7   :  { %v641_v63 = vadd.f32 %v1461_v0, %v640_v62  ;;  %v680_v4 = vmax.f32 %v638_v59, 0.0 }
 0x1f8   :  { %v683_v2 = vmax.f32 %v649_v61, 0.0 }
 0x1f9   :  { %v681_v5 = vmax.f32 %v641_v63, 0.0 }
 0x1fa   :  { %v699_v6 = vpack.c.bf16 %v683_v2, %v682_v1 }
 0x1fb   :  { %v698_v7 = vpack.c.bf16 %v681_v5, %v680_v4 }
 0x1fd   :  { %1215 = vmatprep.mubr.bf16.mxu0 %v698_v7 }
 0x1fe   :  { %1216 = vmatmul.mubr.bf16.gmra.mrb[44].mxu0 %v699_v6 }
 0x299   :  { %v1189_v9 = vpop.f32.mrb[16].mxu0 }
 0x29a   :  { %v814_v10 = vadd.f32 %v1189_v9, %v1498_v8  ;;  %v805_v11 = vpop.f32.mrb[17].mxu0 }
 0x29b   :  { %v806_v12 = vadd.f32 %v1498_v8, %v805_v11  ;;  %v1190_v0 = vpop.f32.mrb[18].mxu0 }
 0x29c   :  { %934 = vst [vmem:[%s1635_s7 + $0x10] sm:$0xff] %v814_v10  ;;  %v817_v13 = vadd.f32 %v1190_v0, %v1498_v8  ;;  %v808_v14 = vpop.f32.mrb[19].mxu0 }
 0x29d   :  { %932 = vst [vmem:[%s1635_s7] sm:$0xff] %v806_v12  ;;  %v809_v15 = vadd.f32 %v1498_v8, %v808_v14 }
 0x29e   :  { %935 = vst [vmem:[%s1635_s7 + $0x18] sm:$0xff] %v817_v13 }
 0x29f   :  { %933 = vst [vmem:[%s1635_s7 + $0x8] sm:$0xff] %v809_v15 }
 0x2a1   :  { %v1193_v16 = vpop.f32.mrb[20].mxu0 }
 0x2a2   :  { %v830_v17 = vadd.f32 %v1193_v16, %v1498_v8  ;;  %v821_v18 = vpop.f32.mrb[21].mxu0 }
 0x2a3   :  { %v822_v19 = vadd.f32 %v1498_v8, %v821_v18  ;;  %v1194_v32 = vpop.f32.mrb[22].mxu0 }
 0x2a4   :  { %938 = vst [vmem:[%s1635_s7 + $0x30] sm:$0xff] %v830_v17  ;;  %v833_v20 = vadd.f32 %v1194_v32, %v1498_v8  ;;  %v824_v3 = vpop.f32.mrb[23].mxu0 }
 0x2a5   :  { %936 = vst [vmem:[%s1635_s7 + $0x20] sm:$0xff] %v822_v19  ;;  %v825_v21 = vadd.f32 %v1498_v8, %v824_v3 }
 0x2a6   :  { %939 = vst [vmem:[%s1635_s7 + $0x38] sm:$0xff] %v833_v20 }
 0x2a7   :  { %937 = vst [vmem:[%s1635_s7 + $0x28] sm:$0xff] %v825_v21 }
 0x2a9   :  { %v1197_v22 = vpop.f32.mrb[24].mxu0 }
 0x2aa   :  { %v846_v23 = vadd.f32 %v1197_v22, %v1498_v8  ;;  %v837_v24 = vpop.f32.mrb[25].mxu0 }
 0x2ab   :  { %v838_v25 = vadd.f32 %v1498_v8, %v837_v24  ;;  %v1198_v26 = vpop.f32.mrb[26].mxu0 }
 0x2ac   :  { %942 = vst [vmem:[%s1635_s7 + $0x50] sm:$0xff] %v846_v23  ;;  %v849_v27 = vadd.f32 %v1198_v26, %v1498_v8  ;;  %v840_v28 = vpop.f32.mrb[27].mxu0 }
 0x2ad   :  { %940 = vst [vmem:[%s1635_s7 + $0x40] sm:$0xff] %v838_v25  ;;  %v841_v29 = vadd.f32 %v1498_v8, %v840_v28 }
 0x2ae   :  { %943 = vst [vmem:[%s1635_s7 + $0x58] sm:$0xff] %v849_v27 }
 0x2af   :  { %941 = vst [vmem:[%s1635_s7 + $0x48] sm:$0xff] %v841_v29 }
 0x2b1   :  { %v1201_v30 = vpop.f32.mrb[28].mxu0 }
 0x2b2   :  { %v862_v31 = vadd.f32 %v1201_v30, %v1498_v8  ;;  %v853_v33 = vpop.f32.mrb[29].mxu0 }
 0x2b3   :  { %v854_v34 = vadd.f32 %v1498_v8, %v853_v33  ;;  %v1202_v35 = vpop.f32.mrb[30].mxu0 }
 0x2b4   :  { %946 = vst [vmem:[%s1635_s7 + $0x70] sm:$0xff] %v862_v31  ;;  %v865_v36 = vadd.f32 %v1202_v35, %v1498_v8  ;;  %v856_v37 = vpop.f32.mrb[31].mxu0 }
 0x2b5   :  { %944 = vst [vmem:[%s1635_s7 + $0x60] sm:$0xff] %v854_v34  ;;  %v857_v38 = vadd.f32 %v1498_v8, %v856_v37 }
 0x2b6   :  { %947 = vst [vmem:[%s1635_s7 + $0x78] sm:$0xff] %v865_v36 }
 0x2b7   :  { %945 = vst [vmem:[%s1635_s7 + $0x68] sm:$0xff] %v857_v38 }
 0x2b9   :  { %v1205_v39 = vpop.f32.mrb[32].mxu0 }
 0x2ba   :  { %v878_v40 = vadd.f32 %v1205_v39, %v1498_v8  ;;  %v869_v41 = vpop.f32.mrb[33].mxu0 }
 0x2bb   :  { %v870_v42 = vadd.f32 %v1498_v8, %v869_v41  ;;  %v1206_v43 = vpop.f32.mrb[34].mxu0 }
 0x2bc   :  { %950 = vst [vmem:[%s1635_s7 + $0x90] sm:$0xff] %v878_v40  ;;  %v881_v44 = vadd.f32 %v1206_v43, %v1498_v8  ;;  %v872_v45 = vpop.f32.mrb[35].mxu0 }
 0x2bd   :  { %948 = vst [vmem:[%s1635_s7 + $0x80] sm:$0xff] %v870_v42  ;;  %v873_v46 = vadd.f32 %v1498_v8, %v872_v45 }
 0x2be   :  { %951 = vst [vmem:[%s1635_s7 + $0x98] sm:$0xff] %v881_v44 }
 0x2bf   :  { %949 = vst [vmem:[%s1635_s7 + $0x88] sm:$0xff] %v873_v46 }
 0x2c1   :  { %v1209_v47 = vpop.f32.mrb[36].mxu0 }
 0x2c2   :  { %v894_v48 = vadd.f32 %v1209_v47, %v1498_v8  ;;  %v885_v49 = vpop.f32.mrb[37].mxu0 }
 0x2c3   :  { %v886_v50 = vadd.f32 %v1498_v8, %v885_v49  ;;  %v1210_v51 = vpop.f32.mrb[38].mxu0 }
 0x2c4   :  { %954 = vst [vmem:[%s1635_s7 + $0xb0] sm:$0xff] %v894_v48  ;;  %v897_v52 = vadd.f32 %v1210_v51, %v1498_v8  ;;  %v888_v53 = vpop.f32.mrb[39].mxu0 }
 0x2c5   :  { %952 = vst [vmem:[%s1635_s7 + $0xa0] sm:$0xff] %v886_v50  ;;  %v889_v54 = vadd.f32 %v1498_v8, %v888_v53 }
 0x2c6   :  { %955 = vst [vmem:[%s1635_s7 + $0xb8] sm:$0xff] %v897_v52 }
 0x2c7   :  { %953 = vst [vmem:[%s1635_s7 + $0xa8] sm:$0xff] %v889_v54 }
 0x2c9   :  { %v1213_v55 = vpop.f32.mrb[40].mxu0 }
 0x2ca   :  { %v910_v56 = vadd.f32 %v1213_v55, %v1498_v8  ;;  %v901_v57 = vpop.f32.mrb[41].mxu0 }
 0x2cb   :  { %v902_v58 = vadd.f32 %v1498_v8, %v901_v57  ;;  %v1214_v59 = vpop.f32.mrb[42].mxu0 }
 0x2cc   :  { %958 = vst [vmem:[%s1635_s7 + $0xd0] sm:$0xff] %v910_v56  ;;  %v913_v60 = vadd.f32 %v1214_v59, %v1498_v8  ;;  %v904_v61 = vpop.f32.mrb[43].mxu0 }
 0x2cd   :  { %956 = vst [vmem:[%s1635_s7 + $0xc0] sm:$0xff] %v902_v58  ;;  %v905_v62 = vadd.f32 %v1498_v8, %v904_v61 }
 0x2ce   :  { %959 = vst [vmem:[%s1635_s7 + $0xd8] sm:$0xff] %v913_v60 }
 0x2cf   :  { %957 = vst [vmem:[%s1635_s7 + $0xc8] sm:$0xff] %v905_v62 }
 0x2d1   :  { %v1217_v63 = vpop.f32.mrb[44].mxu0 }
 0x2d2   :  { %v926_v1 = vadd.f32 %v1217_v63, %v1498_v8  ;;  %v917_v2 = vpop.f32.mrb[45].mxu0 }
 0x2d3   :  { %v918_v4 = vadd.f32 %v1498_v8, %v917_v2  ;;  %v1218_v5 = vpop.f32.mrb[46].mxu0 }
 0x2d4   :  { %962 = vst [vmem:[%s1635_s7 + $0xf0] sm:$0xff] %v926_v1  ;;  %v929_v6 = vadd.f32 %v1218_v5, %v1498_v8  ;;  %v920_v7 = vpop.f32.mrb[47].mxu0 }
 0x2d5   :  { %960 = vst [vmem:[%s1635_s7 + $0xe0] sm:$0xff] %v918_v4  ;;  %v921_v9 = vadd.f32 %v1498_v8, %v920_v7 }
 0x2d6   :  { %963 = vst [vmem:[%s1635_s7 + $0xf8] sm:$0xff] %v929_v6 }
 0x2d7   :  { %961 = vst [vmem:[%s1635_s7 + $0xe8] sm:$0xff] %v921_v9 }

// kernel: spectral_norm_classifier_forward.1
= control target key start
LH: loop header
LB: loop body
LE: loop exit
PB: predicated region body
PF: predicated region fallthrough
CT: control target
= control target key end

     0   :  { %vm162_vm0 = vcmask 261120   ;;  %s1628_s1 = inlined_call_operand.vmem [shape: bf16[32,128], index: 1, kind: input, shape index: {}]   ;;  %s1629_s0 = inlined_call_operand.vmem [shape: bf16[256,32], index: 0, kind: input, shape index: {}]   ;;  %s1630_s3 = inlined_call_operand.vmem [shape: bf16[128,128], index: 3, kind: input, shape index: {}]   ;;  %s1631_s5 = inlined_call_operand.vmem [shape: bf16[128,128], index: 5, kind: input, shape index: {}]   ;;  %s1632_s2 = inlined_call_operand.vmem [shape: f32[1,128], index: 2, kind: input, shape index: {}]   ;;  %s1633_s4 = inlined_call_operand.vmem [shape: f32[1,128], index: 4, kind: input, shape index: {}]   ;;  %s1634_s6 = inlined_call_operand.vmem [shape: f32[1,128], index: 6, kind: input, shape index: {}]   ;;  %s1635_s7 = inlined_call_operand.vmem [shape: f32[256,128], index: 7, kind: output, shape index: {}]  }
   0x1   :  { %v1223_v0 = vld [vmem:[%s1628_s1] sm:$0xff]   ;;  %v1224_v1 = vld [vmem:[%s1628_s1 + $0x8] sm:$0xff]   ;;  %v1227_v4 = vld [vmem:[%s1629_s0 + $0x10] sm:$0xff]  }
   0x2   :  { %1087 = vmatprep.subr.bf16.mxu0 %v1223_v0  ;;  %v1225_v2 = vld [vmem:[%s1629_s0] sm:$0xff]   ;;  %1219 = vmatprep.subr.bf16.mxu1 %v1223_v0  ;;  %v1226_v3 = vld [vmem:[%s1629_s0 + $0x8] sm:$0xff]   ;;  %v1235_v7 = vld [vmem:[%s1629_s0 + $0x50] sm:$0xff]  }
   0x3   :  { %1088 = vmatpush3.bf16.msra.mxu0 %v1223_v0  ;;  %1221 = vmatpush3.bf16.msra.mxu1 %v1223_v0  ;;  %v1233_v5 = vld [vmem:[%s1629_s0 + $0x40] sm:$0xff]   ;;  %v1234_v6 = vld [vmem:[%s1629_s0 + $0x48] sm:$0xff]   ;;  %v1228_v8 = vld [vmem:[%s1629_s0 + $0x18] sm:$0xff]  }
   0x4   :  { %1089 = vmatprep.subr.bf16.mxu0 %v1224_v1  ;;  %1091 = vmatprep.mubr.msk.bf16.mxu0 %vm162_vm0, %v1225_v2  ;;  %v1229_v9 = vld [vmem:[%s1629_s0 + $0x20] sm:$0xff]   ;;  %v1236_v10 = vld [vmem:[%s1629_s0 + $0x58] sm:$0xff]   ;;  %v1242_v13 = vld [vmem:[%s1630_s3 + $0x8] sm:$0xff]  }
   0x5   :  { %1220 = vmatprep.subr.bf16.mxu1 %v1224_v1  ;;  %1107 = vmatprep.mubr.msk.bf16.mxu1 %vm162_vm0, %v1233_v5  ;;  %v1237_v11 = vld [vmem:[%s1629_s0 + $0x60] sm:$0xff]   ;;  %v1230_v14 = vld [vmem:[%s1629_s0 + $0x28] sm:$0xff]   ;;  %v1231_v15 = vld [vmem:[%s1629_s0 + $0x30] sm:$0xff]  }
   0x6   :  { %v1241_v12 = vld [vmem:[%s1630_s3] sm:$0xff]   ;;  %v1243_v16 = vld [vmem:[%s1630_s3 + $0x10] sm:$0xff]   ;;  %v1238_v17 = vld [vmem:[%s1629_s0 + $0x68] sm:$0xff]  }
   0x7   :  { %1090 = vmatpush3.bf16.msra.mxu0 %v1224_v1  ;;  %1222 = vmatpush3.bf16.msra.mxu1 %v1224_v1  ;;  %v1239_v18 = vld [vmem:[%s1629_s0 + $0x70] sm:$0xff]   ;;  %v1244_v19 = vld [vmem:[%s1630_s3 + $0x18] sm:$0xff]   ;;  %v1245_v21 = vld [vmem:[%s1630_s3 + $0x20] sm:$0xff]  }
   0x8   :  { %1123 = vmatprep.subr.bf16.mxu1 %v1241_v12  ;;  %v1232_v20 = vld [vmem:[%s1629_s0 + $0x38] sm:$0xff]   ;;  %v1246_v23 = vld [vmem:[%s1630_s3 + $0x28] sm:$0xff]   ;;  %v1247_v24 = vld [vmem:[%s1630_s3 + $0x30] sm:$0xff]  }
   0x9   :  { %v1240_v22 = vld [vmem:[%s1629_s0 + $0x78] sm:$0xff]   ;;  %v1249_v26 = vld [vmem:[%s1631_s5] sm:$0xff]   ;;  %v1250_v27 = vld [vmem:[%s1631_s5 + $0x8] sm:$0xff]  }
   0xa   :  { %1092 = vmatmul.mubr.msk.bf16.vlgmr.msra.gmra.mrb[0].mxu0 %vm162_vm0, %v1226_v3  ;;  %1108 = vmatmul.mubr.msk.bf16.vlgmr.msra.gmra.mrb[0].mxu1 %vm162_vm0, %v1234_v6  ;;  %v1248_v25 = vld [vmem:[%s1630_s3 + $0x38] sm:$0xff]   ;;  %v1251_v28 = vld [vmem:[%s1631_s5 + $0x10] sm:$0xff]   ;;  %v1253_v30 = vld [vmem:[%s1631_s5 + $0x20] sm:$0xff]  }
   0xb   :  { %1095 = vmatprep.mubr.msk.bf16.mxu0 %vm162_vm0, %v1227_v4  ;;  %1111 = vmatprep.mubr.msk.bf16.mxu1 %vm162_vm0, %v1235_v7  ;;  %v1252_v29 = vld [vmem:[%s1631_s5 + $0x18] sm:$0xff]   ;;  %v1254_v31 = vld [vmem:[%s1631_s5 + $0x28] sm:$0xff]   ;;  %v1412_v32 = vld [vmem:[%s1632_s2] ss:$0 sm:$0xff] }
   0xc   :  { %1124 = vmatpush3.bf16.msra.mxu1 %v1241_v12  ;;  %1171 = vmatprep.subr.bf16.mxu0 %v1249_v26 }
   0xd   :  { %1125 = vmatprep.subr.bf16.mxu1 %v1242_v13  ;;  %1172 = vmatpush3.bf16.msra.mxu0 %v1249_v26 }
   0xe   :  { %1173 = vmatprep.subr.bf16.mxu0 %v1250_v27 }
  0x10   :  { %1126 = vmatpush3.bf16.msra.mxu1 %v1242_v13 }
  0x11   :  { %1127 = vmatprep.subr.bf16.mxu1 %v1243_v16  ;;  %1174 = vmatpush3.bf16.msra.mxu0 %v1250_v27 }
  0x12   :  { %1096 = vmatmul.mubr.msk.bf16.gmra.mrb[4].mxu0 %vm162_vm0, %v1228_v8  ;;  %1112 = vmatmul.mubr.msk.bf16.gmra.mrb[4].mxu1 %vm162_vm0, %v1236_v10 }
  0x13   :  { %1099 = vmatprep.mubr.msk.bf16.mxu0 %vm162_vm0, %v1229_v9  ;;  %1115 = vmatprep.mubr.msk.bf16.mxu1 %vm162_vm0, %v1237_v11 }
  0x14   :  { %1128 = vmatpush3.bf16.msra.mxu1 %v1243_v16  ;;  %1175 = vmatprep.subr.bf16.mxu0 %v1251_v28 }
  0x15   :  { %1129 = vmatprep.subr.bf16.mxu1 %v1244_v19  ;;  %1176 = vmatpush3.bf16.msra.mxu0 %v1251_v28 }
  0x16   :  { %1177 = vmatprep.subr.bf16.mxu0 %v1252_v29 }
  0x18   :  { %1130 = vmatpush3.bf16.msra.mxu1 %v1244_v19 }
  0x19   :  { %1131 = vmatprep.subr.bf16.mxu1 %v1245_v21  ;;  %1178 = vmatpush3.bf16.msra.mxu0 %v1252_v29 }
  0x1a   :  { %1100 = vmatmul.mubr.msk.bf16.gmra.mrb[8].mxu0 %vm162_vm0, %v1230_v14  ;;  %1116 = vmatmul.mubr.msk.bf16.gmra.mrb[8].mxu1 %vm162_vm0, %v1238_v17 }
  0x1b   :  { %1103 = vmatprep.mubr.msk.bf16.mxu0 %vm162_vm0, %v1231_v15  ;;  %1119 = vmatprep.mubr.msk.bf16.mxu1 %vm162_vm0, %v1239_v18 }
  0x1c   :  { %1132 = vmatpush3.bf16.msra.mxu1 %v1245_v21  ;;  %1179 = vmatprep.subr.bf16.mxu0 %v1253_v30 }
  0x1d   :  { %1133 = vmatprep.subr.bf16.mxu1 %v1246_v23  ;;  %1180 = vmatpush3.bf16.msra.mxu0 %v1253_v30 }
  0x1e   :  { %1181 = vmatprep.subr.bf16.mxu0 %v1254_v31 }
  0x20   :  { %1134 = vmatpush3.bf16.msra.mxu1 %v1246_v23 }
  0x21   :  { %1135 = vmatprep.subr.bf16.mxu1 %v1247_v24  ;;  %1182 = vmatpush3.bf16.msra.mxu0 %v1254_v31 }
  0x22   :  { %1104 = vmatmul.mubr.msk.bf16.gmra.mrb[12].mxu0 %vm162_vm0, %v1232_v20  ;;  %1120 = vmatmul.mubr.msk.bf16.gmra.mrb[12].mxu1 %vm162_vm0, %v1240_v22 }
  0x24   :  { %1136 = vmatpush3.bf16.msra.mxu1 %v1247_v24 }
  0x25   :  { %1137 = vmatprep.subr.bf16.mxu1 %v1248_v25 }
  0x28   :  { %1138 = vmatpush3.bf16.msra.mxu1 %v1248_v25 }
  0xdd   :  { %v1093_v33 = vpop.f32.mrb[0].mxu0  ;;  %v1109_v40 = vpop.f32.mrb[0].mxu1 }
  0xde   :  { %v254_v34 = vadd.f32 %v1093_v33, %v1412_v32  ;;  %v245_v35 = vpop.f32.mrb[1].mxu0  ;;  %v318_v42 = vadd.f32 %v1109_v40, %v1412_v32  ;;  %v309_v43 = vpop.f32.mrb[1].mxu1 }
  0xdf   :  { %v246_v36 = vadd.f32 %v1412_v32, %v245_v35  ;;  %v1094_v37 = vpop.f32.mrb[2].mxu0  ;;  %v310_v46 = vadd.f32 %v1412_v32, %v309_v43  ;;  %v1110_v47 = vpop.f32.mrb[2].mxu1 }
  0xe0   :  { %v257_v38 = vadd.f32 %v1094_v37, %v1412_v32  ;;  %v248_v39 = vpop.f32.mrb[3].mxu0  ;;  %v374_v44 = vmax.f32 %v254_v34, 0.0  ;;  %v390_v50 = vmax.f32 %v318_v42, 0.0  ;;  %v321_v51 = vadd.f32 %v1110_v47, %v1412_v32  ;;  %v312_v52 = vpop.f32.mrb[3].mxu1 }
  0xe1   :  { %v249_v41 = vadd.f32 %v1412_v32, %v248_v39  ;;  %v372_v48 = vmax.f32 %v246_v36, 0.0  ;;  %v388_v54 = vmax.f32 %v310_v46, 0.0  ;;  %v313_v55 = vadd.f32 %v1412_v32, %v312_v52 }
  0xe2   :  { %v375_v45 = vmax.f32 %v257_v38, 0.0  ;;  %v391_v58 = vmax.f32 %v321_v51, 0.0 }
  0xe3   :  { %v373_v49 = vmax.f32 %v249_v41, 0.0  ;;  %v389_v61 = vmax.f32 %v313_v55, 0.0 }
  0xe4   :  { %v405_v53 = vpack.c.bf16 %v375_v45, %v374_v44  ;;  %v1424_v0 = vpack.c.bf16 %v391_v58, %v390_v50 }
  0xe5   :  { %v404_v56 = vpack.c.bf16 %v373_v49, %v372_v48  ;;  %v1097_v57 = vpop.f32.mrb[4].mxu0  ;;  %v1427_v3 = vpack.c.bf16 %v389_v61, %v388_v54  ;;  %v1113_v4 = vpop.f32.mrb[4].mxu1 }
  0xe6   :  { %v270_v59 = vadd.f32 %v1097_v57, %v1412_v32  ;;  %v261_v60 = vpop.f32.mrb[5].mxu0  ;;  %v334_v6 = vadd.f32 %v1113_v4, %v1412_v32  ;;  %v325_v7 = vpop.f32.mrb[5].mxu1 }
  0xe7   :  { %v262_v62 = vadd.f32 %v1412_v32, %v261_v60  ;;  %v1098_v63 = vpop.f32.mrb[6].mxu0  ;;  %1139 = vmatprep.mubr.bf16.mxu1 %v404_v56  ;;  %v326_v10 = vadd.f32 %v1412_v32, %v325_v7  ;;  %v1114_v11 = vpop.f32.mrb[6].mxu1 }
  0xe8   :  { %v273_v1 = vadd.f32 %v1098_v63, %v1412_v32  ;;  %v264_v2 = vpop.f32.mrb[7].mxu0  ;;  %1140 = vmatmul.mubr.bf16.vlgmr.msra.gmra.mrb[16].mxu1 %v405_v53  ;;  %v378_v8 = vmax.f32 %v270_v59, 0.0  ;;  %v394_v14 = vmax.f32 %v334_v6, 0.0  ;;  %v337_v15 = vadd.f32 %v1114_v11, %v1412_v32  ;;  %v328_v16 = vpop.f32.mrb[7].mxu1 }
  0xe9   :  { %v265_v5 = vadd.f32 %v1412_v32, %v264_v2  ;;  %v376_v12 = vmax.f32 %v262_v62, 0.0  ;;  %v392_v18 = vmax.f32 %v326_v10, 0.0  ;;  %v329_v19 = vadd.f32 %v1412_v32, %v328_v16 }
  0xea   :  { %v379_v9 = vmax.f32 %v273_v1, 0.0  ;;  %v395_v22 = vmax.f32 %v337_v15, 0.0 }
  0xeb   :  { %v377_v13 = vmax.f32 %v265_v5, 0.0  ;;  %v393_v25 = vmax.f32 %v329_v19, 0.0 }
  0xec   :  { %v407_v17 = vpack.c.bf16 %v379_v9, %v378_v8  ;;  %v415_v28 = vpack.c.bf16 %v395_v22, %v394_v14 }
  0xed   :  { %v406_v20 = vpack.c.bf16 %v377_v13, %v376_v12  ;;  %v1101_v21 = vpop.f32.mrb[8].mxu0  ;;  %v414_v31 = vpack.c.bf16 %v393_v25, %v392_v18  ;;  %v1117_v33 = vpop.f32.mrb[8].mxu1 }
  0xee   :  { %v286_v23 = vadd.f32 %v1101_v21, %v1412_v32  ;;  %v277_v24 = vpop.f32.mrb[9].mxu0  ;;  %v350_v35 = vadd.f32 %v1117_v33, %v1412_v32  ;;  %v341_v36 = vpop.f32.mrb[9].mxu1 }
  0xef   :  { %v278_v26 = vadd.f32 %v1412_v32, %v277_v24  ;;  %v1102_v27 = vpop.f32.mrb[10].mxu0  ;;  %1143 = vmatprep.mubr.bf16.mxu1 %v406_v20  ;;  %v342_v39 = vadd.f32 %v1412_v32, %v341_v36  ;;  %v1118_v40 = vpop.f32.mrb[10].mxu1  ;;  %v1256_v20 = vld [vmem:[%s1631_s5 + $0x38] sm:$0xff]  }
  0xf0   :  { %v289_v29 = vadd.f32 %v1102_v27, %v1412_v32  ;;  %v280_v30 = vpop.f32.mrb[11].mxu0  ;;  %1144 = vmatmul.mubr.bf16.gmra.mrb[20].mxu1 %v407_v17  ;;  %v382_v37 = vmax.f32 %v286_v23, 0.0  ;;  %v398_v43 = vmax.f32 %v350_v35, 0.0  ;;  %v353_v44 = vadd.f32 %v1118_v40, %v1412_v32  ;;  %v344_v45 = vpop.f32.mrb[11].mxu1 }
  0xf1   :  { %v281_v34 = vadd.f32 %v1412_v32, %v280_v30  ;;  %v380_v41 = vmax.f32 %v278_v26, 0.0  ;;  %v396_v47 = vmax.f32 %v342_v39, 0.0  ;;  %v345_v48 = vadd.f32 %v1412_v32, %v344_v45 }
  0xf2   :  { %v383_v38 = vmax.f32 %v289_v29, 0.0  ;;  %v399_v51 = vmax.f32 %v353_v44, 0.0 }
  0xf3   :  { %v381_v42 = vmax.f32 %v281_v34, 0.0  ;;  %v397_v54 = vmax.f32 %v345_v48, 0.0 }
  0xf4   :  { %v409_v46 = vpack.c.bf16 %v383_v38, %v382_v37  ;;  %v417_v57 = vpack.c.bf16 %v399_v51, %v398_v43 }
  0xf5   :  { %v408_v49 = vpack.c.bf16 %v381_v42, %v380_v41  ;;  %v1105_v50 = vpop.f32.mrb[12].mxu0  ;;  %v416_v60 = vpack.c.bf16 %v397_v54, %v396_v47  ;;  %v1121_v61 = vpop.f32.mrb[12].mxu1 }
  0xf6   :  { %v302_v52 = vadd.f32 %v1105_v50, %v1412_v32  ;;  %v293_v53 = vpop.f32.mrb[13].mxu0  ;;  %v366_v63 = vadd.f32 %v1121_v61, %v1412_v32  ;;  %v357_v1 = vpop.f32.mrb[13].mxu1 }
  0xf7   :  { %v294_v55 = vadd.f32 %v1412_v32, %v293_v53  ;;  %v1106_v56 = vpop.f32.mrb[14].mxu0  ;;  %1147 = vmatprep.mubr.bf16.mxu1 %v408_v49  ;;  %v358_v5 = vadd.f32 %v1412_v32, %v357_v1  ;;  %v1122_v6 = vpop.f32.mrb[14].mxu1 }
  0xf8   :  { %v305_v58 = vadd.f32 %v1106_v56, %v1412_v32  ;;  %v296_v59 = vpop.f32.mrb[15].mxu0  ;;  %1148 = vmatmul.mubr.bf16.gmra.mrb[24].mxu1 %v409_v46  ;;  %v386_v2 = vmax.f32 %v302_v52, 0.0  ;;  %v402_v9 = vmax.f32 %v366_v63, 0.0  ;;  %v369_v10 = vadd.f32 %v1122_v6, %v1412_v32  ;;  %v360_v11 = vpop.f32.mrb[15].mxu1 }
  0xf9   :  { %v297_v62 = vadd.f32 %v1412_v32, %v296_v59  ;;  %v384_v7 = vmax.f32 %v294_v55, 0.0  ;;  %v400_v13 = vmax.f32 %v358_v5, 0.0  ;;  %v361_v14 = vadd.f32 %v1412_v32, %v360_v11  ;;  %v1255_v32 = vld [vmem:[%s1631_s5 + $0x30] sm:$0xff]  }
  0xfa   :  { %v387_v4 = vmax.f32 %v305_v58, 0.0  ;;  %v403_v16 = vmax.f32 %v369_v10, 0.0  ;;  %1183 = vmatprep.subr.bf16.mxu0 %v1255_v32 }
  0xfb   :  { %v385_v8 = vmax.f32 %v297_v62, 0.0  ;;  %v401_v17 = vmax.f32 %v361_v14, 0.0  ;;  %1184 = vmatpush3.bf16.msra.mxu0 %v1255_v32 }
  0xfc   :  { %v411_v12 = vpack.c.bf16 %v387_v4, %v386_v2  ;;  %v419_v18 = vpack.c.bf16 %v403_v16, %v402_v9  ;;  %1185 = vmatprep.subr.bf16.mxu0 %v1256_v20 }
  0xfd   :  { %v410_v15 = vpack.c.bf16 %v385_v8, %v384_v7  ;;  %v418_v19 = vpack.c.bf16 %v401_v17, %v400_v13 }
  0xff   :  { %1151 = vmatprep.mubr.bf16.mxu1 %v410_v15  ;;  %1186 = vmatpush3.bf16.msra.mxu0 %v1256_v20 }
 0x100   :  { %1152 = vmatmul.mubr.bf16.gmra.mrb[28].mxu1 %v411_v12 }
 0x101   :  { %1155 = vmatprep.mubr.bf16.mxu1 %v1427_v3 }
 0x108   :  { %1156 = vmatmul.mubr.bf16.gmra.mrb[32].mxu1 %v1424_v0  ;;  %v1461_v0 = vld [vmem:[%s1633_s4] ss:$0 sm:$0xff] }
 0x109   :  { %1159 = vmatprep.mubr.bf16.mxu1 %v414_v31 }
 0x110   :  { %1160 = vmatmul.mubr.bf16.gmra.mrb[36].mxu1 %v415_v28 }
 0x111   :  { %1163 = vmatprep.mubr.bf16.mxu1 %v416_v60 }
 0x118   :  { %1164 = vmatmul.mubr.bf16.gmra.mrb[40].mxu1 %v417_v57 }
 0x119   :  { %1167 = vmatprep.mubr.bf16.mxu1 %v418_v19 }
 0x120   :  { %1168 = vmatmul.mubr.bf16.gmra.mrb[44].mxu1 %v419_v18 }
 0x1bb   :  { %v1141_v3 = vpop.f32.mrb[16].mxu1 }
 0x1bc   :  { %v534_v21 = vadd.f32 %v1141_v3, %v1461_v0  ;;  %v525_v22 = vpop.f32.mrb[17].mxu1 }
 0x1bd   :  { %v526_v23 = vadd.f32 %v1461_v0, %v525_v22  ;;  %v1142_v24 = vpop.f32.mrb[18].mxu1 }
 0x1be   :  { %v537_v25 = vadd.f32 %v1142_v24, %v1461_v0  ;;  %v528_v26 = vpop.f32.mrb[19].mxu1  ;;  %v654_v28 = vmax.f32 %v534_v21, 0.0 }
 0x1bf   :  { %v529_v27 = vadd.f32 %v1461_v0, %v528_v26  ;;  %v652_v30 = vmax.f32 %v526_v23, 0.0 }
 0x1c0   :  { %v655_v29 = vmax.f32 %v537_v25, 0.0 }
 0x1c1   :  { %v653_v31 = vmax.f32 %v529_v27, 0.0 }
 0x1c2   :  { %v685_v33 = vpack.c.bf16 %v655_v29, %v654_v28 }
 0x1c3   :  { %v684_v34 = vpack.c.bf16 %v653_v31, %v652_v30  ;;  %v1145_v35 = vpop.f32.mrb[20].mxu1 }
 0x1c4   :  { %v550_v36 = vadd.f32 %v1145_v35, %v1461_v0  ;;  %v541_v37 = vpop.f32.mrb[21].mxu1 }
 0x1c5   :  { %v542_v38 = vadd.f32 %v1461_v0, %v541_v37  ;;  %v1146_v39 = vpop.f32.mrb[22].mxu1  ;;  %1187 = vmatprep.mubr.bf16.mxu0 %v684_v34 }
 0x1c6   :  { %v553_v40 = vadd.f32 %v1146_v39, %v1461_v0  ;;  %v544_v41 = vpop.f32.mrb[23].mxu1  ;;  %1188 = vmatmul.mubr.bf16.vlgmr.msra.gmra.mrb[16].mxu0 %v685_v33  ;;  %v658_v43 = vmax.f32 %v550_v36, 0.0 }
 0x1c7   :  { %v545_v42 = vadd.f32 %v1461_v0, %v544_v41  ;;  %v656_v45 = vmax.f32 %v542_v38, 0.0 }
 0x1c8   :  { %v659_v44 = vmax.f32 %v553_v40, 0.0 }
 0x1c9   :  { %v657_v46 = vmax.f32 %v545_v42, 0.0 }
 0x1ca   :  { %v687_v47 = vpack.c.bf16 %v659_v44, %v658_v43 }
 0x1cb   :  { %v686_v48 = vpack.c.bf16 %v657_v46, %v656_v45  ;;  %v1149_v49 = vpop.f32.mrb[24].mxu1 }
 0x1cc   :  { %v566_v50 = vadd.f32 %v1149_v49, %v1461_v0  ;;  %v557_v51 = vpop.f32.mrb[25].mxu1 }
 0x1cd   :  { %v558_v52 = vadd.f32 %v1461_v0, %v557_v51  ;;  %v1150_v53 = vpop.f32.mrb[26].mxu1  ;;  %1191 = vmatprep.mubr.bf16.mxu0 %v686_v48 }
 0x1ce   :  { %v569_v54 = vadd.f32 %v1150_v53, %v1461_v0  ;;  %v560_v55 = vpop.f32.mrb[27].mxu1  ;;  %1192 = vmatmul.mubr.bf16.gmra.mrb[20].mxu0 %v687_v47  ;;  %v662_v57 = vmax.f32 %v566_v50, 0.0 }
 0x1cf   :  { %v561_v56 = vadd.f32 %v1461_v0, %v560_v55  ;;  %v660_v59 = vmax.f32 %v558_v52, 0.0 }
 0x1d0   :  { %v663_v58 = vmax.f32 %v569_v54, 0.0 }
 0x1d1   :  { %v661_v60 = vmax.f32 %v561_v56, 0.0 }
 0x1d2   :  { %v689_v61 = vpack.c.bf16 %v663_v58, %v662_v57 }
 0x1d3   :  { %v688_v62 = vpack.c.bf16 %v661_v60, %v660_v59  ;;  %v1153_v63 = vpop.f32.mrb[28].mxu1 }
 0x1d4   :  { %v582_v1 = vadd.f32 %v1153_v63, %v1461_v0  ;;  %v573_v2 = vpop.f32.mrb[29].mxu1 }
 0x1d5   :  { %v574_v4 = vadd.f32 %v1461_v0, %v573_v2  ;;  %v1154_v5 = vpop.f32.mrb[30].mxu1  ;;  %1195 = vmatprep.mubr.bf16.mxu0 %v688_v62 }
 0x1d6   :  { %v585_v6 = vadd.f32 %v1154_v5, %v1461_v0  ;;  %v576_v7 = vpop.f32.mrb[31].mxu1  ;;  %1196 = vmatmul.mubr.bf16.gmra.mrb[24].mxu0 %v689_v61  ;;  %v666_v9 = vmax.f32 %v582_v1, 0.0 }
 0x1d7   :  { %v577_v8 = vadd.f32 %v1461_v0, %v576_v7  ;;  %v664_v11 = vmax.f32 %v574_v4, 0.0 }
 0x1d8   :  { %v667_v10 = vmax.f32 %v585_v6, 0.0 }
 0x1d9   :  { %v665_v12 = vmax.f32 %v577_v8, 0.0  ;;  %v1498_v8 = vld [vmem:[%s1634_s6] ss:$0 sm:$0xff] }
 0x1da   :  { %v691_v13 = vpack.c.bf16 %v667_v10, %v666_v9 }
 0x1db   :  { %v690_v14 = vpack.c.bf16 %v665_v12, %v664_v11  ;;  %v1157_v15 = vpop.f32.mrb[32].mxu1 }
 0x1dc   :  { %v598_v16 = vadd.f32 %v1157_v15, %v1461_v0  ;;  %v589_v17 = vpop.f32.mrb[33].mxu1 }
 0x1dd   :  { %v590_v18 = vadd.f32 %v1461_v0, %v589_v17  ;;  %v1158_v19 = vpop.f32.mrb[34].mxu1  ;;  %1199 = vmatprep.mubr.bf16.mxu0 %v690_v14 }
 0x1de   :  { %v601_v32 = vadd.f32 %v1158_v19, %v1461_v0  ;;  %v592_v20 = vpop.f32.mrb[35].mxu1  ;;  %1200 = vmatmul.mubr.bf16.gmra.mrb[28].mxu0 %v691_v13  ;;  %v670_v21 = vmax.f32 %v598_v16, 0.0 }
 0x1df   :  { %v593_v3 = vadd.f32 %v1461_v0, %v592_v20  ;;  %v668_v23 = vmax.f32 %v590_v18, 0.0 }
 0x1e0   :  { %v671_v22 = vmax.f32 %v601_v32, 0.0 }
 0x1e1   :  { %v669_v24 = vmax.f32 %v593_v3, 0.0 }
 0x1e2   :  { %v693_v25 = vpack.c.bf16 %v671_v22, %v670_v21 }
 0x1e3   :  { %v692_v26 = vpack.c.bf16 %v669_v24, %v668_v23  ;;  %v1161_v27 = vpop.f32.mrb[36].mxu1 }
 0x1e4   :  { %v614_v28 = vadd.f32 %v1161_v27, %v1461_v0  ;;  %v605_v29 = vpop.f32.mrb[37].mxu1 }
 0x1e5   :  { %v606_v30 = vadd.f32 %v1461_v0, %v605_v29  ;;  %v1162_v31 = vpop.f32.mrb[38].mxu1  ;;  %1203 = vmatprep.mubr.bf16.mxu0 %v692_v26 }
 0x1e6   :  { %v617_v33 = vadd.f32 %v1162_v31, %v1461_v0  ;;  %v608_v34 = vpop.f32.mrb[39].mxu1  ;;  %1204 = vmatmul.mubr.bf16.gmra.mrb[32].mxu0 %v693_v25  ;;  %v674_v36 = vmax.f32 %v614_v28, 0.0 }
 0x1e7   :  { %v609_v35 = vadd.f32 %v1461_v0, %v608_v34  ;;  %v672_v38 = vmax.f32 %v606_v30, 0.0 }
 0x1e8   :  { %v675_v37 = vmax.f32 %v617_v33, 0.0 }
 0x1e9   :  { %v673_v39 = vmax.f32 %v609_v35, 0.0 }
 0x1ea   :  { %v695_v40 = vpack.c.bf16 %v675_v37, %v674_v36 }
 0x1eb   :  { %v694_v41 = vpack.c.bf16 %v673_v39, %v672_v38  ;;  %v1165_v42 = vpop.f32.mrb[40].mxu1 }
 0x1ec   :  { %v630_v43 = vadd.f32 %v1165_v42, %v1461_v0  ;;  %v621_v44 = vpop.f32.mrb[41].mxu1 }
 0x1ed   :  { %v622_v45 = vadd.f32 %v1461_v0, %v621_v44  ;;  %v1166_v46 = vpop.f32.mrb[42].mxu1  ;;  %1207 = vmatprep.mubr.bf16.mxu0 %v694_v41 }
 0x1ee   :  { %v633_v47 = vadd.f32 %v1166_v46, %v1461_v0  ;;  %v624_v48 = vpop.f32.mrb[43].mxu1  ;;  %1208 = vmatmul.mubr.bf16.gmra.mrb[36].mxu0 %v695_v40  ;;  %v678_v50 = vmax.f32 %v630_v43, 0.0 }
 0x1ef   :  { %v625_v49 = vadd.f32 %v1461_v0, %v624_v48  ;;  %v676_v52 = vmax.f32 %v622_v45, 0.0 }
 0x1f0   :  { %v679_v51 = vmax.f32 %v633_v47, 0.0 }
 0x1f1   :  { %v677_v53 = vmax.f32 %v625_v49, 0.0 }
 0x1f2   :  { %v697_v54 = vpack.c.bf16 %v679_v51, %v678_v50 }
 0x1f3   :  { %v696_v55 = vpack.c.bf16 %v677_v53, %v676_v52  ;;  %v1169_v56 = vpop.f32.mrb[44].mxu1 }
 0x1f4   :  { %v646_v57 = vadd.f32 %v1169_v56, %v1461_v0  ;;  %v637_v58 = vpop.f32.mrb[45].mxu1 }
 0x1f5   :  { %v638_v59 = vadd.f32 %v1461_v0, %v637_v58  ;;  %v1170_v60 = vpop.f32.mrb[46].mxu1  ;;  %1211 = vmatprep.mubr.bf16.mxu0 %v696_v55 }
 0x1f6   :  { %v649_v61 = vadd.f32 %v1170_v60, %v1461_v0  ;;  %v640_v62 = vpop.f32.mrb[47].mxu1  ;;  %1212 = vmatmul.mubr.bf16.gmra.mrb[40].mxu0 %v697_v54  ;;  %v682_v1 = vmax.f32 %v646_v57, 0.0 }
 0x1f7   :  { %v641_v63 = vadd.f32 %v1461_v0, %v640_v62  ;;  %v680_v4 = vmax.f32 %v638_v59, 0.0 }
 0x1f8   :  { %v683_v2 = vmax.f32 %v649_v61, 0.0 }
 0x1f9   :  { %v681_v5 = vmax.f32 %v641_v63, 0.0 }
 0x1fa   :  { %v699_v6 = vpack.c.bf16 %v683_v2, %v682_v1 }
 0x1fb   :  { %v698_v7 = vpack.c.bf16 %v681_v5, %v680_v4 }
 0x1fd   :  { %1215 = vmatprep.mubr.bf16.mxu0 %v698_v7 }
 0x1fe   :  { %1216 = vmatmul.mubr.bf16.gmra.mrb[44].mxu0 %v699_v6 }
 0x299   :  { %v1189_v9 = vpop.f32.mrb[16].mxu0 }
 0x29a   :  { %v814_v10 = vadd.f32 %v1189_v9, %v1498_v8  ;;  %v805_v11 = vpop.f32.mrb[17].mxu0 }
 0x29b   :  { %v806_v12 = vadd.f32 %v1498_v8, %v805_v11  ;;  %v1190_v0 = vpop.f32.mrb[18].mxu0 }
 0x29c   :  { %934 = vst [vmem:[%s1635_s7 + $0x10] sm:$0xff] %v814_v10  ;;  %v817_v13 = vadd.f32 %v1190_v0, %v1498_v8  ;;  %v808_v14 = vpop.f32.mrb[19].mxu0 }
 0x29d   :  { %932 = vst [vmem:[%s1635_s7] sm:$0xff] %v806_v12  ;;  %v809_v15 = vadd.f32 %v1498_v8, %v808_v14 }
 0x29e   :  { %935 = vst [vmem:[%s1635_s7 + $0x18] sm:$0xff] %v817_v13 }
 0x29f   :  { %933 = vst [vmem:[%s1635_s7 + $0x8] sm:$0xff] %v809_v15 }
 0x2a1   :  { %v1193_v16 = vpop.f32.mrb[20].mxu0 }
 0x2a2   :  { %v830_v17 = vadd.f32 %v1193_v16, %v1498_v8  ;;  %v821_v18 = vpop.f32.mrb[21].mxu0 }
 0x2a3   :  { %v822_v19 = vadd.f32 %v1498_v8, %v821_v18  ;;  %v1194_v32 = vpop.f32.mrb[22].mxu0 }
 0x2a4   :  { %938 = vst [vmem:[%s1635_s7 + $0x30] sm:$0xff] %v830_v17  ;;  %v833_v20 = vadd.f32 %v1194_v32, %v1498_v8  ;;  %v824_v3 = vpop.f32.mrb[23].mxu0 }
 0x2a5   :  { %936 = vst [vmem:[%s1635_s7 + $0x20] sm:$0xff] %v822_v19  ;;  %v825_v21 = vadd.f32 %v1498_v8, %v824_v3 }
 0x2a6   :  { %939 = vst [vmem:[%s1635_s7 + $0x38] sm:$0xff] %v833_v20 }
 0x2a7   :  { %937 = vst [vmem:[%s1635_s7 + $0x28] sm:$0xff] %v825_v21 }
 0x2a9   :  { %v1197_v22 = vpop.f32.mrb[24].mxu0 }
 0x2aa   :  { %v846_v23 = vadd.f32 %v1197_v22, %v1498_v8  ;;  %v837_v24 = vpop.f32.mrb[25].mxu0 }
 0x2ab   :  { %v838_v25 = vadd.f32 %v1498_v8, %v837_v24  ;;  %v1198_v26 = vpop.f32.mrb[26].mxu0 }
 0x2ac   :  { %942 = vst [vmem:[%s1635_s7 + $0x50] sm:$0xff] %v846_v23  ;;  %v849_v27 = vadd.f32 %v1198_v26, %v1498_v8  ;;  %v840_v28 = vpop.f32.mrb[27].mxu0 }
 0x2ad   :  { %940 = vst [vmem:[%s1635_s7 + $0x40] sm:$0xff] %v838_v25  ;;  %v841_v29 = vadd.f32 %v1498_v8, %v840_v28 }
 0x2ae   :  { %943 = vst [vmem:[%s1635_s7 + $0x58] sm:$0xff] %v849_v27 }
 0x2af   :  { %941 = vst [vmem:[%s1635_s7 + $0x48] sm:$0xff] %v841_v29 }
 0x2b1   :  { %v1201_v30 = vpop.f32.mrb[28].mxu0 }
 0x2b2   :  { %v862_v31 = vadd.f32 %v1201_v30, %v1498_v8  ;;  %v853_v33 = vpop.f32.mrb[29].mxu0 }
 0x2b3   :  { %v854_v34 = vadd.f32 %v1498_v8, %v853_v33  ;;  %v1202_v35 = vpop.f32.mrb[30].mxu0 }
 0x2b4   :  { %946 = vst [vmem:[%s1635_s7 + $0x70] sm:$0xff] %v862_v31  ;;  %v865_v36 = vadd.f32 %v1202_v35, %v1498_v8  ;;  %v856_v37 = vpop.f32.mrb[31].mxu0 }
 0x2b5   :  { %944 = vst [vmem:[%s1635_s7 + $0x60] sm:$0xff] %v854_v34  ;;  %v857_v38 = vadd.f32 %v1498_v8, %v856_v37 }
 0x2b6   :  { %947 = vst [vmem:[%s1635_s7 + $0x78] sm:$0xff] %v865_v36 }
 0x2b7   :  { %945 = vst [vmem:[%s1635_s7 + $0x68] sm:$0xff] %v857_v38 }
 0x2b9   :  { %v1205_v39 = vpop.f32.mrb[32].mxu0 }
 0x2ba   :  { %v878_v40 = vadd.f32 %v1205_v39, %v1498_v8  ;;  %v869_v41 = vpop.f32.mrb[33].mxu0 }
 0x2bb   :  { %v870_v42 = vadd.f32 %v1498_v8, %v869_v41  ;;  %v1206_v43 = vpop.f32.mrb[34].mxu0 }
 0x2bc   :  { %950 = vst [vmem:[%s1635_s7 + $0x90] sm:$0xff] %v878_v40  ;;  %v881_v44 = vadd.f32 %v1206_v43, %v1498_v8  ;;  %v872_v45 = vpop.f32.mrb[35].mxu0 }
 0x2bd   :  { %948 = vst [vmem:[%s1635_s7 + $0x80] sm:$0xff] %v870_v42  ;;  %v873_v46 = vadd.f32 %v1498_v8, %v872_v45 }
 0x2be   :  { %951 = vst [vmem:[%s1635_s7 + $0x98] sm:$0xff] %v881_v44 }
 0x2bf   :  { %949 = vst [vmem:[%s1635_s7 + $0x88] sm:$0xff] %v873_v46 }
 0x2c1   :  { %v1209_v47 = vpop.f32.mrb[36].mxu0 }
 0x2c2   :  { %v894_v48 = vadd.f32 %v1209_v47, %v1498_v8  ;;  %v885_v49 = vpop.f32.mrb[37].mxu0 }
 0x2c3   :  { %v886_v50 = vadd.f32 %v1498_v8, %v885_v49  ;;  %v1210_v51 = vpop.f32.mrb[38].mxu0 }
 0x2c4   :  { %954 = vst [vmem:[%s1635_s7 + $0xb0] sm:$0xff] %v894_v48  ;;  %v897_v52 = vadd.f32 %v1210_v51, %v1498_v8  ;;  %v888_v53 = vpop.f32.mrb[39].mxu0 }
 0x2c5   :  { %952 = vst [vmem:[%s1635_s7 + $0xa0] sm:$0xff] %v886_v50  ;;  %v889_v54 = vadd.f32 %v1498_v8, %v888_v53 }
 0x2c6   :  { %955 = vst [vmem:[%s1635_s7 + $0xb8] sm:$0xff] %v897_v52 }
 0x2c7   :  { %953 = vst [vmem:[%s1635_s7 + $0xa8] sm:$0xff] %v889_v54 }
 0x2c9   :  { %v1213_v55 = vpop.f32.mrb[40].mxu0 }
 0x2ca   :  { %v910_v56 = vadd.f32 %v1213_v55, %v1498_v8  ;;  %v901_v57 = vpop.f32.mrb[41].mxu0 }
 0x2cb   :  { %v902_v58 = vadd.f32 %v1498_v8, %v901_v57  ;;  %v1214_v59 = vpop.f32.mrb[42].mxu0 }
 0x2cc   :  { %958 = vst [vmem:[%s1635_s7 + $0xd0] sm:$0xff] %v910_v56  ;;  %v913_v60 = vadd.f32 %v1214_v59, %v1498_v8  ;;  %v904_v61 = vpop.f32.mrb[43].mxu0 }
 0x2cd   :  { %956 = vst [vmem:[%s1635_s7 + $0xc0] sm:$0xff] %v902_v58  ;;  %v905_v62 = vadd.f32 %v1498_v8, %v904_v61 }
 0x2ce   :  { %959 = vst [vmem:[%s1635_s7 + $0xd8] sm:$0xff] %v913_v60 }
 0x2cf   :  { %957 = vst [vmem:[%s1635_s7 + $0xc8] sm:$0xff] %v905_v62 }
 0x2d1   :  { %v1217_v63 = vpop.f32.mrb[44].mxu0 }
 0x2d2   :  { %v926_v1 = vadd.f32 %v1217_v63, %v1498_v8  ;;  %v917_v2 = vpop.f32.mrb[45].mxu0 }
 0x2d3   :  { %v918_v4 = vadd.f32 %v1498_v8, %v917_v2  ;;  %v1218_v5 = vpop.f32.mrb[46].mxu0 }
 0x2d4   :  { %962 = vst [vmem:[%s1635_s7 + $0xf0] sm:$0xff] %v926_v1  ;;  %v929_v6 = vadd.f32 %v1218_v5, %v1498_v8  ;;  %v920_v7 = vpop.f32.mrb[47].mxu0 }
 0x2d5   :  { %960 = vst [vmem:[%s1635_s7 + $0xe0] sm:$0xff] %v918_v4  ;;  %v921_v9 = vadd.f32 %v1498_v8, %v920_v7 }
 0x2d6   :  { %963 = vst [vmem:[%s1635_s7 + $0xf8] sm:$0xff] %v929_v6 }
 0x2d7   :  { %961 = vst [vmem:[%s1635_s7 + $0xe8] sm:$0xff] %v921_v9 }

</bundles_post_ra>
